<compile_context>
chip_gen: v6e
topology: v6e:2x2x1
jax: 0.10.0
libtpu: 0.0.40
codegen_flags: <defaults>
</compile_context>

<pallas_src>
import functools

import jax
import jax.numpy as jnp
from jax.experimental import pallas as pl
from jax.experimental.pallas import tpu as pltpu


def _round_up(x, m):
    return ((x + m - 1) // m) * m


def _cdiv(a, b):
    return -(-a // b)


# ---------------------------------------------------------------------------
# Kernel: fused 3x3/s2 conv (9 tap dots) + two 1x1 convs, each + shift + ReLU.
# ---------------------------------------------------------------------------
def _nin_kernel(x00, x01, x10, x11, w1_ref, w2_ref, w3_ref, shift_ref, o_ref,
                *, th, Wo, Cip, Cp):
    quads = ((x00, x01), (x10, x11))          # [row parity][col parity]
    r0 = pl.program_id(1) * th                # first output row of this tile
    M = th * Wo

    # ---- stage 1: 3x3 stride-2 conv as 9 accumulated dots (BN1 scale folded
    #      into the weight columns), f32 accumulation.
    acc = jnp.zeros((M, Cp), jnp.float32)
    for kh in range(3):
        a, roff = kh % 2, kh // 2
        for kw in range(3):
            b, coff = kw % 2, kw // 2
            xr = quads[a][b]
            tap = xr[:, pl.ds(r0 + roff, th), coff:coff + Wo, :]   # (1, th, Wo, Cip)
            acc = acc + jnp.dot(tap.reshape(M, Cip), w1_ref[3 * kh + kw],
                                preferred_element_type=jnp.float32)

    sh = shift_ref[...]                        # (3, Cp) f32
    y = jnp.maximum(acc + sh[0:1, :], 0.0)

    # ---- stage 2: 1x1 conv + shift + ReLU
    y = jnp.dot(y.astype(w2_ref.dtype), w2_ref[...],
                preferred_element_type=jnp.float32)
    y = jnp.maximum(y + sh[1:2, :], 0.0)

    # ---- stage 3: 1x1 conv + shift + ReLU
    y = jnp.dot(y.astype(w3_ref.dtype), w3_ref[...],
                preferred_element_type=jnp.float32)
    y = jnp.maximum(y + sh[2:3, :], 0.0)

    o_ref[...] = y.reshape(1, th, Wo, Cp).astype(o_ref.dtype)


# ---------------------------------------------------------------------------
# Host-side helpers
# ---------------------------------------------------------------------------
def bn_fold(conv_bias, gamma, beta, mean, var, eps=1e-5):
    """Eval-mode BN + conv bias -> per-channel (scale, shift). Done in f32."""
    scale = gamma / jnp.sqrt(var + eps)
    shift = beta - mean * scale + conv_bias * scale
    return scale, shift


def _vmem_cap_bytes():
    """Per-core VMEM budget: ~85% of capacity (<=100 MiB), fallback 48 MiB."""
    try:
        info = pltpu.get_tpu_info()
        cap = getattr(info, "vmem_capacity_bytes", None)
        if cap:
            return min(max(int(cap * 0.85), 32 << 20), 100 << 20)
    except Exception:
        pass
    return 48 << 20


def _vmem_estimate(th, n_tiles, Wo, Wq, Cip, Cp, out_itemsize):
    """Rough per-core VMEM footprint: pipeline buffers + kernel intermediates."""
    Hq = n_tiles * th + 1
    M = th * Wo
    quads = 4 * 2 * Hq * Wq * Cip * 2                         # 4 inputs, 2 bufs, bf16
    weights = (9 * Cip * Cp + 2 * Cp * Cp) * 2 + 3 * Cp * 4   # single-buffered
    out = 2 * M * Cp * out_itemsize                           # out tile, 2 bufs
    interm = 4 * M * Cp * 4 + 2 * M * Cp * 2 + 2 * M * Cip * 2  # acc/y + casts + taps
    return quads + weights + out + interm


def _pick_row_tile(N, Ho, fits):
    """Largest output-row tile that fits VMEM; prefer an even total step count
    (v7x: 2 TensorCores share the parallel grid) unless it shrinks the tile >2x."""
    fitting = [th for th in range(Ho, 0, -1) if fits(th)]
    if not fitting:
        return 1
    best = fitting[0]
    for th in fitting:
        if (N * _cdiv(Ho, th)) % 2 == 0:
            return th if 2 * th >= best else best
    return best


def nin_block(x_nchw, params, *, out_layout="NCHW", out_dtype=jnp.float32):
    """Forward pass of NiNBlock. x: (N, Cin, H, W) f32 -> (N, Cout, Ho, Wo)."""
    (w1, b1, g1, be1, m1, v1,
     w2, b2, g2, be2, m2, v2,
     w3, b3, g3, be3, m3, v3) = params

    N, Cin, H, W = x_nchw.shape
    Cout = w1.shape[0]
    Ho = (H - 1) // 2 + 1                      # conv: k=3, s=2, p=1
    Wo = (W - 1) // 2 + 1

    Cp = _round_up(Cout, 128)                  # lane-dense output channels
    Cip = _round_up(Cin, 8)                    # mild contraction-dim alignment
    Wq = Wo + 1

    cap = _vmem_cap_bytes()
    out_isize = jnp.dtype(out_dtype).itemsize
    fits = lambda th: _vmem_estimate(th, _cdiv(Ho, th), Wo, Wq, Cip, Cp,
                                     out_isize) <= cap
    th = _pick_row_tile(N, Ho, fits)
    n_tiles = _cdiv(Ho, th)
    Hop = n_tiles * th                         # padded output rows
    Hq = Hop + 1                               # quadrant rows (incl. +1 halo)

    # ----- one host restructuring pass: NHWC, zero border pad, stride-2
    #       deinterleave into 4 quadrant arrays (bf16 for the MXU).
    x_nhwc = jnp.transpose(x_nchw, (0, 2, 3, 1)).astype(jnp.bfloat16)
    xp = jnp.zeros((N, 2 * Hq, 2 * Wq, Cip), jnp.bfloat16)
    xp = xp.at[:, 1:H + 1, 1:W + 1, :Cin].set(x_nhwc)
    x00 = xp[:, 0::2, 0::2, :]                 # even rows, even cols
    x01 = xp[:, 0::2, 1::2, :]                 # even rows, odd  cols
    x10 = xp[:, 1::2, 0::2, :]                 # odd  rows, even cols
    x11 = xp[:, 1::2, 1::2, :]                 # odd  rows, odd  cols

    # ----- fold BN scale into weight columns (in f32), then cast to bf16.
    s1, t1 = bn_fold(b1, g1, be1, m1, v1)
    s2, t2 = bn_fold(b2, g2, be2, m2, v2)
    s3, t3 = bn_fold(b3, g3, be3, m3, v3)

    W1 = jnp.transpose(w1, (2, 3, 1, 0)).reshape(9, Cin, Cout) * s1[None, None, :]
    W2 = jnp.transpose(w2[:, :, 0, 0], (1, 0)) * s2[None, :]
    W3 = jnp.transpose(w3[:, :, 0, 0], (1, 0)) * s3[None, :]

    W1p = jnp.zeros((9, Cip, Cp), jnp.bfloat16).at[:, :Cin, :Cout].set(
        W1.astype(jnp.bfloat16))
    W2p = jnp.zeros((Cp, Cp), jnp.bfloat16).at[:Cout, :Cout].set(
        W2.astype(jnp.bfloat16))
    W3p = jnp.zeros((Cp, Cp), jnp.bfloat16).at[:Cout, :Cout].set(
        W3.astype(jnp.bfloat16))
    shifts = jnp.zeros((3, Cp), jnp.float32)
    shifts = shifts.at[0, :Cout].set(t1).at[1, :Cout].set(t2).at[2, :Cout].set(t3)

    kernel = functools.partial(_nin_kernel, th=th, Wo=Wo, Cip=Cip, Cp=Cp)

    flops = 2 * N * Hop * Wo * (9 * Cip * Cp + 2 * Cp * Cp)
    bytes_acc = (4 * N * Hq * Wq * Cip * 2
                 + (9 * Cip * Cp + 2 * Cp * Cp) * 2 + 3 * Cp * 4
                 + N * Hop * Wo * Cp * out_isize)
    cost = pl.CostEstimate(flops=flops, transcendentals=0,
                           bytes_accessed=bytes_acc)

    def quad_spec():
        return pl.BlockSpec((1, Hq, Wq, Cip), lambda n, t: (n, 0, 0, 0))

    def build_call(single_buffer_weights):
        def const_spec(shape):
            zeros = (0,) * len(shape)
            if single_buffer_weights:
                return pl.BlockSpec(shape, lambda n, t, _z=zeros: _z,
                                    pipeline_mode=pl.Buffered(1))
            return pl.BlockSpec(shape, lambda n, t, _z=zeros: _z)

        return pl.pallas_call(
            kernel,
            out_shape=jax.ShapeDtypeStruct((N, Hop, Wo, Cp), out_dtype),
            grid_spec=pltpu.PrefetchScalarGridSpec(
                num_scalar_prefetch=0,
                grid=(N, n_tiles),
                in_specs=[
                    quad_spec(), quad_spec(), quad_spec(), quad_spec(),
                    const_spec((9, Cip, Cp)),     # W1 (BN1-scaled), per-tap
                    const_spec((Cp, Cp)),         # W2 (BN2-scaled)
                    const_spec((Cp, Cp)),         # W3 (BN3-scaled)
                    const_spec((3, Cp)),          # stacked shifts (f32)
                ],
                out_specs=pl.BlockSpec((1, th, Wo, Cp), lambda n, t: (n, t, 0, 0)),
            ),
            compiler_params=pltpu.CompilerParams(
                dimension_semantics=("parallel", "parallel"),
                vmem_limit_bytes=int(cap)),
            cost_estimate=cost,
        )

    args = (x00, x01, x10, x11, W1p, W2p, W3p, shifts)
    try:
        out = build_call(True)(*args)
    except Exception:
        # Some JAX versions may reject pipeline_mode=pl.Buffered(1); default
        # double-buffering only costs VMEM, not correctness.
        out = build_call(False)(*args)

    out = out[:, :Ho, :, :Cout]                 # drop row-tile / channel padding
    if out_layout == "NHWC":
        return out
    return jnp.transpose(out, (0, 3, 1, 2))     # NCHW (module semantics)


# ---------------------------------------------------------------------------
# Pure-JAX reference (eval-mode BN), mirrors the PyTorch module.
# ---------------------------------------------------------------------------
def reference_nin_block(x_nchw, params, eps=1e-5):
    (w1, b1, g1, be1, m1, v1,
     w2, b2, g2, be2, m2, v2,
     w3, b3, g3, be3, m3, v3) = params

    def conv(x, w, b, stride, pad):
        y = jax.lax.conv_general_dilated(
            x, w, window_strides=(stride, stride),
            padding=[(pad, pad), (pad, pad)],
            dimension_numbers=("NCHW", "OIHW", "NCHW"))
        return y + b[None, :, None, None]

    def bn(x, g, be, m, v):
        return (x - m[None, :, None, None]) / jnp.sqrt(v[None, :, None, None] + eps) \
               * g[None, :, None, None] + be[None, :, None, None]

    y = jnp.maximum(bn(conv(x_nchw, w1, b1, 2, 1), g1, be1, m1, v1), 0.0)
    y = jnp.maximum(bn(conv(y, w2, b2, 1, 0), g2, be2, m2, v2), 0.0)
    y = jnp.maximum(bn(conv(y, w3, b3, 1, 0), g3, be3, m3, v3), 0.0)
    return y


def make_params(key, inplanes, planes):
    ks = jax.random.split(key, 12)
    f32 = jnp.float32
    w1 = jax.random.normal(ks[0], (planes, inplanes, 3, 3), f32) * 0.1
    b1 = jax.random.normal(ks[1], (planes,), f32) * 0.1
    w2 = jax.random.normal(ks[2], (planes, planes, 1, 1), f32) * 0.1
    b2 = jax.random.normal(ks[3], (planes,), f32) * 0.1
    w3 = jax.random.normal(ks[4], (planes, planes, 1, 1), f32) * 0.1
    b3 = jax.random.normal(ks[5], (planes,), f32) * 0.1
    g1 = 1.0 + 0.1 * jax.random.normal(ks[6], (planes,), f32)
    be1 = 0.1 * jax.random.normal(ks[7], (planes,), f32)
    m1 = 0.05 * jax.random.normal(ks[8], (planes,), f32)
    v1 = 0.5 + jnp.abs(jax.random.normal(ks[9], (planes,), f32)) * 0.2
    g2, be2, m2, v2 = g1 * 0.9, be1 * 0.5, m1 * 0.3, v1 * 1.1
    g3, be3, m3, v3 = g1 * 1.1, -be1 * 0.7, -m1 * 0.2, v1 * 0.9
    return (w1, b1, g1, be1, m1, v1,
            w2, b2, g2, be2, m2, v2,
            w3, b3, g3, be3, m3, v3)


if __name__ == "__main__":
    N, Cin, H, W = 2, 4, 16, 16
    planes = 8

    key = jax.random.PRNGKey(0)
    kx, kp = jax.random.split(key)
    x = jax.random.normal(kx, (N, Cin, H, W), jnp.float32)
    params = make_params(kp, Cin, planes)

    out = jax.block_until_ready(nin_block(x, params))
    ref = jax.block_until_ready(reference_nin_block(x, params))

    assert out.shape == (N, planes, H // 2, W // 2), out.shape
    # bf16 MXU inputs -> loosened tolerance (accumulation is still f32).
    assert jnp.allclose(out, ref, atol=3e-2, rtol=3e-2), \
        float(jnp.max(jnp.abs(out - ref)))
    print("KERNEL_OK")
</pallas_src>

<mosaic_0001>
module attributes {stable_mosaic.version = 11 : i64} {
  func.func @_nin_kernel(%arg0: i32, %arg1: i32, %arg2: memref<1x9x9x8xbf16, #tpu.memory_space<vmem>>, %arg3: memref<1x9x9x8xbf16, #tpu.memory_space<vmem>>, %arg4: memref<1x9x9x8xbf16, #tpu.memory_space<vmem>>, %arg5: memref<1x9x9x8xbf16, #tpu.memory_space<vmem>>, %arg6: memref<9x8x128xbf16, #tpu.memory_space<vmem>>, %arg7: memref<128x128xbf16, #tpu.memory_space<vmem>>, %arg8: memref<128x128xbf16, #tpu.memory_space<vmem>>, %arg9: memref<3x128xf32, #tpu.memory_space<vmem>>, %arg10: memref<1x8x8x128xf32, #tpu.memory_space<vmem>>) attributes {dimension_semantics = [#tpu.dimension_semantics<parallel>, #tpu.dimension_semantics<parallel>], iteration_bounds = array<i64: 2, 1>, scalar_prefetch = 0 : i64, scratch_operands = 0 : i64, tpu.core_type = #tpu.core_type<tc>, window_params = [{transform_indices = @transform_0, window_bounds = array<i64: 1, 9, 9, 8>}, {transform_indices = @transform_1, window_bounds = array<i64: 1, 9, 9, 8>}, {transform_indices = @transform_2, window_bounds = array<i64: 1, 9, 9, 8>}, {transform_indices = @transform_3, window_bounds = array<i64: 1, 9, 9, 8>}, {pipeline_mode = #tpu.pipeline_mode<synchronous>, transform_indices = @transform_4, window_bounds = array<i64: 9, 8, 128>}, {pipeline_mode = #tpu.pipeline_mode<synchronous>, transform_indices = @transform_5, window_bounds = array<i64: 128, 128>}, {pipeline_mode = #tpu.pipeline_mode<synchronous>, transform_indices = @transform_6, window_bounds = array<i64: 128, 128>}, {pipeline_mode = #tpu.pipeline_mode<synchronous>, transform_indices = @transform_7, window_bounds = array<i64: 3, 128>}, {transform_indices = @transform_8, window_bounds = array<i64: 1, 8, 8, 128>}]} {
    %c8_i32 = arith.constant 8 : i32
    %0 = arith.muli %arg1, %c8_i32 : i32
    %cst = arith.constant 0.000000e+00 : f32
    %1 = vector.broadcast %cst : f32 to vector<64x128xf32>
    %c0_i32 = arith.constant 0 : i32
    %2 = arith.addi %0, %c0_i32 : i32
    %c0 = arith.constant 0 : index
    %3 = arith.index_cast %2 : i32 to index
    %c0_0 = arith.constant 0 : index
    %c0_1 = arith.constant 0 : index
    %4 = vector.load %arg2[%c0, %3, %c0_0, %c0_1] : memref<1x9x9x8xbf16, #tpu.memory_space<vmem>>, vector<1x8x8x8xbf16>
    %5 = vector.shape_cast %4 : vector<1x8x8x8xbf16> to vector<64x8xbf16>
    %c0_2 = arith.constant 0 : index
    %c0_3 = arith.constant 0 : index
    %c0_4 = arith.constant 0 : index
    %6 = vector.load %arg6[%c0_2, %c0_3, %c0_4] : memref<9x8x128xbf16, #tpu.memory_space<vmem>>, vector<1x8x128xbf16>
    %7 = vector.shape_cast %6 : vector<1x8x128xbf16> to vector<8x128xbf16>
    %cst_5 = arith.constant dense<0.000000e+00> : vector<64x128xf32>
    %8 = tpu.matmul %5, %7, %cst_5 {dimension_numbers = #tpu.dot_dimension_numbers<[1], [0], [0], [1], [0, 0, 1, 1], [], []>} : vector<64x8xbf16>, vector<8x128xbf16>, vector<64x128xf32> -> vector<64x128xf32>
    %9 = arith.addf %1, %8 : vector<64x128xf32>
    %c0_i32_6 = arith.constant 0 : i32
    %10 = arith.addi %0, %c0_i32_6 : i32
    %c0_7 = arith.constant 0 : index
    %11 = arith.index_cast %10 : i32 to index
    %c0_8 = arith.constant 0 : index
    %c0_9 = arith.constant 0 : index
    %12 = vector.load %arg3[%c0_7, %11, %c0_8, %c0_9] : memref<1x9x9x8xbf16, #tpu.memory_space<vmem>>, vector<1x8x8x8xbf16>
    %13 = vector.shape_cast %12 : vector<1x8x8x8xbf16> to vector<64x8xbf16>
    %c1 = arith.constant 1 : index
    %c0_10 = arith.constant 0 : index
    %c0_11 = arith.constant 0 : index
    %14 = vector.load %arg6[%c1, %c0_10, %c0_11] : memref<9x8x128xbf16, #tpu.memory_space<vmem>>, vector<1x8x128xbf16>
    %15 = vector.shape_cast %14 : vector<1x8x128xbf16> to vector<8x128xbf16>
    %cst_12 = arith.constant dense<0.000000e+00> : vector<64x128xf32>
    %16 = tpu.matmul %13, %15, %cst_12 {dimension_numbers = #tpu.dot_dimension_numbers<[1], [0], [0], [1], [0, 0, 1, 1], [], []>} : vector<64x8xbf16>, vector<8x128xbf16>, vector<64x128xf32> -> vector<64x128xf32>
    %17 = arith.addf %9, %16 : vector<64x128xf32>
    %c0_i32_13 = arith.constant 0 : i32
    %18 = arith.addi %0, %c0_i32_13 : i32
    %c0_14 = arith.constant 0 : index
    %19 = arith.index_cast %18 : i32 to index
    %c1_15 = arith.constant 1 : index
    %c0_16 = arith.constant 0 : index
    %20 = vector.load %arg2[%c0_14, %19, %c1_15, %c0_16] : memref<1x9x9x8xbf16, #tpu.memory_space<vmem>>, vector<1x8x8x8xbf16>
    %21 = vector.shape_cast %20 : vector<1x8x8x8xbf16> to vector<64x8xbf16>
    %c2 = arith.constant 2 : index
    %c0_17 = arith.constant 0 : index
    %c0_18 = arith.constant 0 : index
    %22 = vector.load %arg6[%c2, %c0_17, %c0_18] : memref<9x8x128xbf16, #tpu.memory_space<vmem>>, vector<1x8x128xbf16>
    %23 = vector.shape_cast %22 : vector<1x8x128xbf16> to vector<8x128xbf16>
    %cst_19 = arith.constant dense<0.000000e+00> : vector<64x128xf32>
    %24 = tpu.matmul %21, %23, %cst_19 {dimension_numbers = #tpu.dot_dimension_numbers<[1], [0], [0], [1], [0, 0, 1, 1], [], []>} : vector<64x8xbf16>, vector<8x128xbf16>, vector<64x128xf32> -> vector<64x128xf32>
    %25 = arith.addf %17, %24 : vector<64x128xf32>
    %c0_i32_20 = arith.constant 0 : i32
    %26 = arith.addi %0, %c0_i32_20 : i32
    %c0_21 = arith.constant 0 : index
    %27 = arith.index_cast %26 : i32 to index
    %c0_22 = arith.constant 0 : index
    %c0_23 = arith.constant 0 : index
    %28 = vector.load %arg4[%c0_21, %27, %c0_22, %c0_23] : memref<1x9x9x8xbf16, #tpu.memory_space<vmem>>, vector<1x8x8x8xbf16>
    %29 = vector.shape_cast %28 : vector<1x8x8x8xbf16> to vector<64x8xbf16>
    %c3 = arith.constant 3 : index
    %c0_24 = arith.constant 0 : index
    %c0_25 = arith.constant 0 : index
    %30 = vector.load %arg6[%c3, %c0_24, %c0_25] : memref<9x8x128xbf16, #tpu.memory_space<vmem>>, vector<1x8x128xbf16>
    %31 = vector.shape_cast %30 : vector<1x8x128xbf16> to vector<8x128xbf16>
    %cst_26 = arith.constant dense<0.000000e+00> : vector<64x128xf32>
    %32 = tpu.matmul %29, %31, %cst_26 {dimension_numbers = #tpu.dot_dimension_numbers<[1], [0], [0], [1], [0, 0, 1, 1], [], []>} : vector<64x8xbf16>, vector<8x128xbf16>, vector<64x128xf32> -> vector<64x128xf32>
    %33 = arith.addf %25, %32 : vector<64x128xf32>
    %c0_i32_27 = arith.constant 0 : i32
    %34 = arith.addi %0, %c0_i32_27 : i32
    %c0_28 = arith.constant 0 : index
    %35 = arith.index_cast %34 : i32 to index
    %c0_29 = arith.constant 0 : index
    %c0_30 = arith.constant 0 : index
    %36 = vector.load %arg5[%c0_28, %35, %c0_29, %c0_30] : memref<1x9x9x8xbf16, #tpu.memory_space<vmem>>, vector<1x8x8x8xbf16>
    %37 = vector.shape_cast %36 : vector<1x8x8x8xbf16> to vector<64x8xbf16>
    %c4 = arith.constant 4 : index
    %c0_31 = arith.constant 0 : index
    %c0_32 = arith.constant 0 : index
    %38 = vector.load %arg6[%c4, %c0_31, %c0_32] : memref<9x8x128xbf16, #tpu.memory_space<vmem>>, vector<1x8x128xbf16>
    %39 = vector.shape_cast %38 : vector<1x8x128xbf16> to vector<8x128xbf16>
    %cst_33 = arith.constant dense<0.000000e+00> : vector<64x128xf32>
    %40 = tpu.matmul %37, %39, %cst_33 {dimension_numbers = #tpu.dot_dimension_numbers<[1], [0], [0], [1], [0, 0, 1, 1], [], []>} : vector<64x8xbf16>, vector<8x128xbf16>, vector<64x128xf32> -> vector<64x128xf32>
    %41 = arith.addf %33, %40 : vector<64x128xf32>
    %c0_i32_34 = arith.constant 0 : i32
    %42 = arith.addi %0, %c0_i32_34 : i32
    %c0_35 = arith.constant 0 : index
    %43 = arith.index_cast %42 : i32 to index
    %c1_36 = arith.constant 1 : index
    %c0_37 = arith.constant 0 : index
    %44 = vector.load %arg4[%c0_35, %43, %c1_36, %c0_37] : memref<1x9x9x8xbf16, #tpu.memory_space<vmem>>, vector<1x8x8x8xbf16>
    %45 = vector.shape_cast %44 : vector<1x8x8x8xbf16> to vector<64x8xbf16>
    %c5 = arith.constant 5 : index
    %c0_38 = arith.constant 0 : index
    %c0_39 = arith.constant 0 : index
    %46 = vector.load %arg6[%c5, %c0_38, %c0_39] : memref<9x8x128xbf16, #tpu.memory_space<vmem>>, vector<1x8x128xbf16>
    %47 = vector.shape_cast %46 : vector<1x8x128xbf16> to vector<8x128xbf16>
    %cst_40 = arith.constant dense<0.000000e+00> : vector<64x128xf32>
    %48 = tpu.matmul %45, %47, %cst_40 {dimension_numbers = #tpu.dot_dimension_numbers<[1], [0], [0], [1], [0, 0, 1, 1], [], []>} : vector<64x8xbf16>, vector<8x128xbf16>, vector<64x128xf32> -> vector<64x128xf32>
    %49 = arith.addf %41, %48 : vector<64x128xf32>
    %c1_i32 = arith.constant 1 : i32
    %50 = arith.addi %0, %c1_i32 : i32
    %c0_41 = arith.constant 0 : index
    %51 = arith.index_cast %50 : i32 to index
    %c0_42 = arith.constant 0 : index
    %c0_43 = arith.constant 0 : index
    %52 = vector.load %arg2[%c0_41, %51, %c0_42, %c0_43] : memref<1x9x9x8xbf16, #tpu.memory_space<vmem>>, vector<1x8x8x8xbf16>
    %53 = vector.shape_cast %52 : vector<1x8x8x8xbf16> to vector<64x8xbf16>
    %c6 = arith.constant 6 : index
    %c0_44 = arith.constant 0 : index
    %c0_45 = arith.constant 0 : index
    %54 = vector.load %arg6[%c6, %c0_44, %c0_45] : memref<9x8x128xbf16, #tpu.memory_space<vmem>>, vector<1x8x128xbf16>
    %55 = vector.shape_cast %54 : vector<1x8x128xbf16> to vector<8x128xbf16>
    %cst_46 = arith.constant dense<0.000000e+00> : vector<64x128xf32>
    %56 = tpu.matmul %53, %55, %cst_46 {dimension_numbers = #tpu.dot_dimension_numbers<[1], [0], [0], [1], [0, 0, 1, 1], [], []>} : vector<64x8xbf16>, vector<8x128xbf16>, vector<64x128xf32> -> vector<64x128xf32>
    %57 = arith.addf %49, %56 : vector<64x128xf32>
    %c1_i32_47 = arith.constant 1 : i32
    %58 = arith.addi %0, %c1_i32_47 : i32
    %c0_48 = arith.constant 0 : index
    %59 = arith.index_cast %58 : i32 to index
    %c0_49 = arith.constant 0 : index
    %c0_50 = arith.constant 0 : index
    %60 = vector.load %arg3[%c0_48, %59, %c0_49, %c0_50] : memref<1x9x9x8xbf16, #tpu.memory_space<vmem>>, vector<1x8x8x8xbf16>
    %61 = vector.shape_cast %60 : vector<1x8x8x8xbf16> to vector<64x8xbf16>
    %c7 = arith.constant 7 : index
    %c0_51 = arith.constant 0 : index
    %c0_52 = arith.constant 0 : index
    %62 = vector.load %arg6[%c7, %c0_51, %c0_52] : memref<9x8x128xbf16, #tpu.memory_space<vmem>>, vector<1x8x128xbf16>
    %63 = vector.shape_cast %62 : vector<1x8x128xbf16> to vector<8x128xbf16>
    %cst_53 = arith.constant dense<0.000000e+00> : vector<64x128xf32>
    %64 = tpu.matmul %61, %63, %cst_53 {dimension_numbers = #tpu.dot_dimension_numbers<[1], [0], [0], [1], [0, 0, 1, 1], [], []>} : vector<64x8xbf16>, vector<8x128xbf16>, vector<64x128xf32> -> vector<64x128xf32>
    %65 = arith.addf %57, %64 : vector<64x128xf32>
    %c1_i32_54 = arith.constant 1 : i32
    %66 = arith.addi %0, %c1_i32_54 : i32
    %c0_55 = arith.constant 0 : index
    %67 = arith.index_cast %66 : i32 to index
    %c1_56 = arith.constant 1 : index
    %c0_57 = arith.constant 0 : index
    %68 = vector.load %arg2[%c0_55, %67, %c1_56, %c0_57] : memref<1x9x9x8xbf16, #tpu.memory_space<vmem>>, vector<1x8x8x8xbf16>
    %69 = vector.shape_cast %68 : vector<1x8x8x8xbf16> to vector<64x8xbf16>
    %c8 = arith.constant 8 : index
    %c0_58 = arith.constant 0 : index
    %c0_59 = arith.constant 0 : index
    %70 = vector.load %arg6[%c8, %c0_58, %c0_59] : memref<9x8x128xbf16, #tpu.memory_space<vmem>>, vector<1x8x128xbf16>
    %71 = vector.shape_cast %70 : vector<1x8x128xbf16> to vector<8x128xbf16>
    %cst_60 = arith.constant dense<0.000000e+00> : vector<64x128xf32>
    %72 = tpu.matmul %69, %71, %cst_60 {dimension_numbers = #tpu.dot_dimension_numbers<[1], [0], [0], [1], [0, 0, 1, 1], [], []>} : vector<64x8xbf16>, vector<8x128xbf16>, vector<64x128xf32> -> vector<64x128xf32>
    %73 = arith.addf %65, %72 : vector<64x128xf32>
    %c0_61 = arith.constant 0 : index
    %c0_62 = arith.constant 0 : index
    %74 = vector.load %arg9[%c0_61, %c0_62] : memref<3x128xf32, #tpu.memory_space<vmem>>, vector<3x128xf32>
    %75 = vector.extract_strided_slice %74 {offsets = [0, 0], sizes = [1, 128], strides = [1, 1]} : vector<3x128xf32> to vector<1x128xf32>
    %76 = vector.broadcast %75 : vector<1x128xf32> to vector<64x128xf32>
    %77 = arith.addf %73, %76 : vector<64x128xf32>
    %cst_63 = arith.constant 0.000000e+00 : f32
    %78 = vector.broadcast %cst_63 : f32 to vector<64x128xf32>
    %79 = arith.maximumf %77, %78 : vector<64x128xf32>
    %80 = arith.truncf %79 : vector<64x128xf32> to vector<64x128xbf16>
    %c0_64 = arith.constant 0 : index
    %c0_65 = arith.constant 0 : index
    %81 = vector.load %arg7[%c0_64, %c0_65] : memref<128x128xbf16, #tpu.memory_space<vmem>>, vector<128x128xbf16>
    %cst_66 = arith.constant dense<0.000000e+00> : vector<64x128xf32>
    %82 = tpu.matmul %80, %81, %cst_66 {dimension_numbers = #tpu.dot_dimension_numbers<[1], [0], [0], [1], [0, 0, 1, 1], [], []>} : vector<64x128xbf16>, vector<128x128xbf16>, vector<64x128xf32> -> vector<64x128xf32>
    %83 = vector.extract_strided_slice %74 {offsets = [1, 0], sizes = [1, 128], strides = [1, 1]} : vector<3x128xf32> to vector<1x128xf32>
    %84 = vector.broadcast %83 : vector<1x128xf32> to vector<64x128xf32>
    %85 = arith.addf %82, %84 : vector<64x128xf32>
    %cst_67 = arith.constant 0.000000e+00 : f32
    %86 = vector.broadcast %cst_67 : f32 to vector<64x128xf32>
    %87 = arith.maximumf %85, %86 : vector<64x128xf32>
    %88 = arith.truncf %87 : vector<64x128xf32> to vector<64x128xbf16>
    %c0_68 = arith.constant 0 : index
    %c0_69 = arith.constant 0 : index
    %89 = vector.load %arg8[%c0_68, %c0_69] : memref<128x128xbf16, #tpu.memory_space<vmem>>, vector<128x128xbf16>
    %cst_70 = arith.constant dense<0.000000e+00> : vector<64x128xf32>
    %90 = tpu.matmul %88, %89, %cst_70 {dimension_numbers = #tpu.dot_dimension_numbers<[1], [0], [0], [1], [0, 0, 1, 1], [], []>} : vector<64x128xbf16>, vector<128x128xbf16>, vector<64x128xf32> -> vector<64x128xf32>
    %91 = vector.extract_strided_slice %74 {offsets = [2, 0], sizes = [1, 128], strides = [1, 1]} : vector<3x128xf32> to vector<1x128xf32>
    %92 = vector.broadcast %91 : vector<1x128xf32> to vector<64x128xf32>
    %93 = arith.addf %90, %92 : vector<64x128xf32>
    %cst_71 = arith.constant 0.000000e+00 : f32
    %94 = vector.broadcast %cst_71 : f32 to vector<64x128xf32>
    %95 = arith.maximumf %93, %94 : vector<64x128xf32>
    %96 = vector.shape_cast %95 : vector<64x128xf32> to vector<1x8x8x128xf32>
    %c0_72 = arith.constant 0 : index
    %c0_73 = arith.constant 0 : index
    %c0_74 = arith.constant 0 : index
    %c0_75 = arith.constant 0 : index
    %97 = vector.load %arg10[%c0_72, %c0_73, %c0_74, %c0_75] : memref<1x8x8x128xf32, #tpu.memory_space<vmem>>, vector<1x8x8x128xf32>
    tpu.vector_store %arg10[%c0_72, %c0_73, %c0_74, %c0_75], %96 {strides = array<i32>} : memref<1x8x8x128xf32, #tpu.memory_space<vmem>>, vector<1x8x8x128xf32>,
    return
  }
  func.func @transform_0(%arg0: i32, %arg1: i32) -> (i32, i32, i32, i32) {
    %c0_i32 = arith.constant 0 : i32
    %c0_i32_0 = arith.constant 0 : i32
    %c0_i32_1 = arith.constant 0 : i32
    %c0_i32_2 = arith.constant 0 : i32
    return %arg0, %c0_i32, %c0_i32_0, %c0_i32_1 : i32, i32, i32, i32
  }
  func.func @transform_1(%arg0: i32, %arg1: i32) -> (i32, i32, i32, i32) {
    %c0_i32 = arith.constant 0 : i32
    %c0_i32_0 = arith.constant 0 : i32
    %c0_i32_1 = arith.constant 0 : i32
    %c0_i32_2 = arith.constant 0 : i32
    return %arg0, %c0_i32, %c0_i32_0, %c0_i32_1 : i32, i32, i32, i32
  }
  func.func @transform_2(%arg0: i32, %arg1: i32) -> (i32, i32, i32, i32) {
    %c0_i32 = arith.constant 0 : i32
    %c0_i32_0 = arith.constant 0 : i32
    %c0_i32_1 = arith.constant 0 : i32
    %c0_i32_2 = arith.constant 0 : i32
    return %arg0, %c0_i32, %c0_i32_0, %c0_i32_1 : i32, i32, i32, i32
  }
  func.func @transform_3(%arg0: i32, %arg1: i32) -> (i32, i32, i32, i32) {
    %c0_i32 = arith.constant 0 : i32
    %c0_i32_0 = arith.constant 0 : i32
    %c0_i32_1 = arith.constant 0 : i32
    %c0_i32_2 = arith.constant 0 : i32
    return %arg0, %c0_i32, %c0_i32_0, %c0_i32_1 : i32, i32, i32, i32
  }
  func.func @transform_4(%arg0: i32, %arg1: i32) -> (i32, i32, i32) {
    %c0_i32 = arith.constant 0 : i32
    %c0_i32_0 = arith.constant 0 : i32
    %c0_i32_1 = arith.constant 0 : i32
    %c0_i32_2 = arith.constant 0 : i32
    return %c0_i32, %c0_i32_0, %c0_i32_1 : i32, i32, i32
  }
  func.func @transform_5(%arg0: i32, %arg1: i32) -> (i32, i32) {
    %c0_i32 = arith.constant 0 : i32
    %c0_i32_0 = arith.constant 0 : i32
    %c0_i32_1 = arith.constant 0 : i32
    return %c0_i32, %c0_i32_0 : i32, i32
  }
  func.func @transform_6(%arg0: i32, %arg1: i32) -> (i32, i32) {
    %c0_i32 = arith.constant 0 : i32
    %c0_i32_0 = arith.constant 0 : i32
    %c0_i32_1 = arith.constant 0 : i32
    return %c0_i32, %c0_i32_0 : i32, i32
  }
  func.func @transform_7(%arg0: i32, %arg1: i32) -> (i32, i32) {
    %c0_i32 = arith.constant 0 : i32
    %c0_i32_0 = arith.constant 0 : i32
    %c0_i32_1 = arith.constant 0 : i32
    return %c0_i32, %c0_i32_0 : i32, i32
  }
  func.func @transform_8(%arg0: i32, %arg1: i32) -> (i32, i32, i32, i32) {
    %c0_i32 = arith.constant 0 : i32
    %c0_i32_0 = arith.constant 0 : i32
    %c0_i32_1 = arith.constant 0 : i32
    return %arg0, %arg1, %c0_i32, %c0_i32_0 : i32, i32, i32, i32
  }
}

module attributes {stable_mosaic.version = 11 : i64} {
  func.func @_nin_kernel(%arg0: i32, %arg1: i32, %arg2: memref<1x9x9x8xbf16, #tpu.memory_space<vmem>>, %arg3: memref<1x9x9x8xbf16, #tpu.memory_space<vmem>>, %arg4: memref<1x9x9x8xbf16, #tpu.memory_space<vmem>>, %arg5: memref<1x9x9x8xbf16, #tpu.memory_space<vmem>>, %arg6: memref<9x8x128xbf16, #tpu.memory_space<vmem>>, %arg7: memref<128x128xbf16, #tpu.memory_space<vmem>>, %arg8: memref<128x128xbf16, #tpu.memory_space<vmem>>, %arg9: memref<3x128xf32, #tpu.memory_space<vmem>>, %arg10: memref<1x8x8x128xf32, #tpu.memory_space<vmem>>) attributes {dimension_semantics = [#tpu.dimension_semantics<parallel>, #tpu.dimension_semantics<parallel>], iteration_bounds = array<i64: 2, 1>, scalar_prefetch = 0 : i64, scratch_operands = 0 : i64, tpu.core_type = #tpu.core_type<tc>, window_params = [{transform_indices = @transform_0, window_bounds = array<i64: 1, 9, 9, 8>}, {transform_indices = @transform_1, window_bounds = array<i64: 1, 9, 9, 8>}, {transform_indices = @transform_2, window_bounds = array<i64: 1, 9, 9, 8>}, {transform_indices = @transform_3, window_bounds = array<i64: 1, 9, 9, 8>}, {pipeline_mode = #tpu.pipeline_mode<synchronous>, transform_indices = @transform_4, window_bounds = array<i64: 9, 8, 128>}, {pipeline_mode = #tpu.pipeline_mode<synchronous>, transform_indices = @transform_5, window_bounds = array<i64: 128, 128>}, {pipeline_mode = #tpu.pipeline_mode<synchronous>, transform_indices = @transform_6, window_bounds = array<i64: 128, 128>}, {pipeline_mode = #tpu.pipeline_mode<synchronous>, transform_indices = @transform_7, window_bounds = array<i64: 3, 128>}, {transform_indices = @transform_8, window_bounds = array<i64: 1, 8, 8, 128>}]} {
    %c8_i32 = arith.constant 8 : i32
    %0 = arith.muli %arg1, %c8_i32 : i32
    %cst = arith.constant 0.000000e+00 : f32
    %1 = vector.broadcast %cst : f32 to vector<64x128xf32>
    %c0_i32 = arith.constant 0 : i32
    %2 = arith.addi %0, %c0_i32 : i32
    %c0 = arith.constant 0 : index
    %3 = arith.index_cast %2 : i32 to index
    %c0_0 = arith.constant 0 : index
    %c0_1 = arith.constant 0 : index
    %4 = vector.load %arg2[%c0, %3, %c0_0, %c0_1] : memref<1x9x9x8xbf16, #tpu.memory_space<vmem>>, vector<1x8x8x8xbf16>
    %5 = vector.shape_cast %4 : vector<1x8x8x8xbf16> to vector<64x8xbf16>
    %c0_2 = arith.constant 0 : index
    %c0_3 = arith.constant 0 : index
    %c0_4 = arith.constant 0 : index
    %6 = vector.load %arg6[%c0_2, %c0_3, %c0_4] : memref<9x8x128xbf16, #tpu.memory_space<vmem>>, vector<1x8x128xbf16>
    %7 = vector.shape_cast %6 : vector<1x8x128xbf16> to vector<8x128xbf16>
    %cst_5 = arith.constant dense<0.000000e+00> : vector<64x128xf32>
    %8 = tpu.matmul %5, %7, %cst_5 {dimension_numbers = #tpu.dot_dimension_numbers<[1], [0], [0], [1], [0, 0, 1, 1], [], []>} : vector<64x8xbf16>, vector<8x128xbf16>, vector<64x128xf32> -> vector<64x128xf32>
    %9 = arith.addf %1, %8 : vector<64x128xf32>
    %c0_i32_6 = arith.constant 0 : i32
    %10 = arith.addi %0, %c0_i32_6 : i32
    %c0_7 = arith.constant 0 : index
    %11 = arith.index_cast %10 : i32 to index
    %c0_8 = arith.constant 0 : index
    %c0_9 = arith.constant 0 : index
    %12 = vector.load %arg3[%c0_7, %11, %c0_8, %c0_9] : memref<1x9x9x8xbf16, #tpu.memory_space<vmem>>, vector<1x8x8x8xbf16>
    %13 = vector.shape_cast %12 : vector<1x8x8x8xbf16> to vector<64x8xbf16>
    %c1 = arith.constant 1 : index
    %c0_10 = arith.constant 0 : index
    %c0_11 = arith.constant 0 : index
    %14 = vector.load %arg6[%c1, %c0_10, %c0_11] : memref<9x8x128xbf16, #tpu.memory_space<vmem>>, vector<1x8x128xbf16>
    %15 = vector.shape_cast %14 : vector<1x8x128xbf16> to vector<8x128xbf16>
    %cst_12 = arith.constant dense<0.000000e+00> : vector<64x128xf32>
    %16 = tpu.matmul %13, %15, %cst_12 {dimension_numbers = #tpu.dot_dimension_numbers<[1], [0], [0], [1], [0, 0, 1, 1], [], []>} : vector<64x8xbf16>, vector<8x128xbf16>, vector<64x128xf32> -> vector<64x128xf32>
    %17 = arith.addf %9, %16 : vector<64x128xf32>
    %c0_i32_13 = arith.constant 0 : i32
    %18 = arith.addi %0, %c0_i32_13 : i32
    %c0_14 = arith.constant 0 : index
    %19 = arith.index_cast %18 : i32 to index
    %c1_15 = arith.constant 1 : index
    %c0_16 = arith.constant 0 : index
    %20 = vector.load %arg2[%c0_14, %19, %c1_15, %c0_16] : memref<1x9x9x8xbf16, #tpu.memory_space<vmem>>, vector<1x8x8x8xbf16>
    %21 = vector.shape_cast %20 : vector<1x8x8x8xbf16> to vector<64x8xbf16>
    %c2 = arith.constant 2 : index
    %c0_17 = arith.constant 0 : index
    %c0_18 = arith.constant 0 : index
    %22 = vector.load %arg6[%c2, %c0_17, %c0_18] : memref<9x8x128xbf16, #tpu.memory_space<vmem>>, vector<1x8x128xbf16>
    %23 = vector.shape_cast %22 : vector<1x8x128xbf16> to vector<8x128xbf16>
    %cst_19 = arith.constant dense<0.000000e+00> : vector<64x128xf32>
    %24 = tpu.matmul %21, %23, %cst_19 {dimension_numbers = #tpu.dot_dimension_numbers<[1], [0], [0], [1], [0, 0, 1, 1], [], []>} : vector<64x8xbf16>, vector<8x128xbf16>, vector<64x128xf32> -> vector<64x128xf32>
    %25 = arith.addf %17, %24 : vector<64x128xf32>
    %c0_i32_20 = arith.constant 0 : i32
    %26 = arith.addi %0, %c0_i32_20 : i32
    %c0_21 = arith.constant 0 : index
    %27 = arith.index_cast %26 : i32 to index
    %c0_22 = arith.constant 0 : index
    %c0_23 = arith.constant 0 : index
    %28 = vector.load %arg4[%c0_21, %27, %c0_22, %c0_23] : memref<1x9x9x8xbf16, #tpu.memory_space<vmem>>, vector<1x8x8x8xbf16>
    %29 = vector.shape_cast %28 : vector<1x8x8x8xbf16> to vector<64x8xbf16>
    %c3 = arith.constant 3 : index
    %c0_24 = arith.constant 0 : index
    %c0_25 = arith.constant 0 : index
    %30 = vector.load %arg6[%c3, %c0_24, %c0_25] : memref<9x8x128xbf16, #tpu.memory_space<vmem>>, vector<1x8x128xbf16>
    %31 = vector.shape_cast %30 : vector<1x8x128xbf16> to vector<8x128xbf16>
    %cst_26 = arith.constant dense<0.000000e+00> : vector<64x128xf32>
    %32 = tpu.matmul %29, %31, %cst_26 {dimension_numbers = #tpu.dot_dimension_numbers<[1], [0], [0], [1], [0, 0, 1, 1], [], []>} : vector<64x8xbf16>, vector<8x128xbf16>, vector<64x128xf32> -> vector<64x128xf32>
    %33 = arith.addf %25, %32 : vector<64x128xf32>
    %c0_i32_27 = arith.constant 0 : i32
    %34 = arith.addi %0, %c0_i32_27 : i32
    %c0_28 = arith.constant 0 : index
    %35 = arith.index_cast %34 : i32 to index
    %c0_29 = arith.constant 0 : index
    %c0_30 = arith.constant 0 : index
    %36 = vector.load %arg5[%c0_28, %35, %c0_29, %c0_30] : memref<1x9x9x8xbf16, #tpu.memory_space<vmem>>, vector<1x8x8x8xbf16>
    %37 = vector.shape_cast %36 : vector<1x8x8x8xbf16> to vector<64x8xbf16>
    %c4 = arith.constant 4 : index
    %c0_31 = arith.constant 0 : index
    %c0_32 = arith.constant 0 : index
    %38 = vector.load %arg6[%c4, %c0_31, %c0_32] : memref<9x8x128xbf16, #tpu.memory_space<vmem>>, vector<1x8x128xbf16>
    %39 = vector.shape_cast %38 : vector<1x8x128xbf16> to vector<8x128xbf16>
    %cst_33 = arith.constant dense<0.000000e+00> : vector<64x128xf32>
    %40 = tpu.matmul %37, %39, %cst_33 {dimension_numbers = #tpu.dot_dimension_numbers<[1], [0], [0], [1], [0, 0, 1, 1], [], []>} : vector<64x8xbf16>, vector<8x128xbf16>, vector<64x128xf32> -> vector<64x128xf32>
    %41 = arith.addf %33, %40 : vector<64x128xf32>
    %c0_i32_34 = arith.constant 0 : i32
    %42 = arith.addi %0, %c0_i32_34 : i32
    %c0_35 = arith.constant 0 : index
    %43 = arith.index_cast %42 : i32 to index
    %c1_36 = arith.constant 1 : index
    %c0_37 = arith.constant 0 : index
    %44 = vector.load %arg4[%c0_35, %43, %c1_36, %c0_37] : memref<1x9x9x8xbf16, #tpu.memory_space<vmem>>, vector<1x8x8x8xbf16>
    %45 = vector.shape_cast %44 : vector<1x8x8x8xbf16> to vector<64x8xbf16>
    %c5 = arith.constant 5 : index
    %c0_38 = arith.constant 0 : index
    %c0_39 = arith.constant 0 : index
    %46 = vector.load %arg6[%c5, %c0_38, %c0_39] : memref<9x8x128xbf16, #tpu.memory_space<vmem>>, vector<1x8x128xbf16>
    %47 = vector.shape_cast %46 : vector<1x8x128xbf16> to vector<8x128xbf16>
    %cst_40 = arith.constant dense<0.000000e+00> : vector<64x128xf32>
    %48 = tpu.matmul %45, %47, %cst_40 {dimension_numbers = #tpu.dot_dimension_numbers<[1], [0], [0], [1], [0, 0, 1, 1], [], []>} : vector<64x8xbf16>, vector<8x128xbf16>, vector<64x128xf32> -> vector<64x128xf32>
    %49 = arith.addf %41, %48 : vector<64x128xf32>
    %c1_i32 = arith.constant 1 : i32
    %50 = arith.addi %0, %c1_i32 : i32
    %c0_41 = arith.constant 0 : index
    %51 = arith.index_cast %50 : i32 to index
    %c0_42 = arith.constant 0 : index
    %c0_43 = arith.constant 0 : index
    %52 = vector.load %arg2[%c0_41, %51, %c0_42, %c0_43] : memref<1x9x9x8xbf16, #tpu.memory_space<vmem>>, vector<1x8x8x8xbf16>
    %53 = vector.shape_cast %52 : vector<1x8x8x8xbf16> to vector<64x8xbf16>
    %c6 = arith.constant 6 : index
    %c0_44 = arith.constant 0 : index
    %c0_45 = arith.constant 0 : index
    %54 = vector.load %arg6[%c6, %c0_44, %c0_45] : memref<9x8x128xbf16, #tpu.memory_space<vmem>>, vector<1x8x128xbf16>
    %55 = vector.shape_cast %54 : vector<1x8x128xbf16> to vector<8x128xbf16>
    %cst_46 = arith.constant dense<0.000000e+00> : vector<64x128xf32>
    %56 = tpu.matmul %53, %55, %cst_46 {dimension_numbers = #tpu.dot_dimension_numbers<[1], [0], [0], [1], [0, 0, 1, 1], [], []>} : vector<64x8xbf16>, vector<8x128xbf16>, vector<64x128xf32> -> vector<64x128xf32>
    %57 = arith.addf %49, %56 : vector<64x128xf32>
    %c1_i32_47 = arith.constant 1 : i32
    %58 = arith.addi %0, %c1_i32_47 : i32
    %c0_48 = arith.constant 0 : index
    %59 = arith.index_cast %58 : i32 to index
    %c0_49 = arith.constant 0 : index
    %c0_50 = arith.constant 0 : index
    %60 = vector.load %arg3[%c0_48, %59, %c0_49, %c0_50] : memref<1x9x9x8xbf16, #tpu.memory_space<vmem>>, vector<1x8x8x8xbf16>
    %61 = vector.shape_cast %60 : vector<1x8x8x8xbf16> to vector<64x8xbf16>
    %c7 = arith.constant 7 : index
    %c0_51 = arith.constant 0 : index
    %c0_52 = arith.constant 0 : index
    %62 = vector.load %arg6[%c7, %c0_51, %c0_52] : memref<9x8x128xbf16, #tpu.memory_space<vmem>>, vector<1x8x128xbf16>
    %63 = vector.shape_cast %62 : vector<1x8x128xbf16> to vector<8x128xbf16>
    %cst_53 = arith.constant dense<0.000000e+00> : vector<64x128xf32>
    %64 = tpu.matmul %61, %63, %cst_53 {dimension_numbers = #tpu.dot_dimension_numbers<[1], [0], [0], [1], [0, 0, 1, 1], [], []>} : vector<64x8xbf16>, vector<8x128xbf16>, vector<64x128xf32> -> vector<64x128xf32>
    %65 = arith.addf %57, %64 : vector<64x128xf32>
    %c1_i32_54 = arith.constant 1 : i32
    %66 = arith.addi %0, %c1_i32_54 : i32
    %c0_55 = arith.constant 0 : index
    %67 = arith.index_cast %66 : i32 to index
    %c1_56 = arith.constant 1 : index
    %c0_57 = arith.constant 0 : index
    %68 = vector.load %arg2[%c0_55, %67, %c1_56, %c0_57] : memref<1x9x9x8xbf16, #tpu.memory_space<vmem>>, vector<1x8x8x8xbf16>
    %69 = vector.shape_cast %68 : vector<1x8x8x8xbf16> to vector<64x8xbf16>
    %c8 = arith.constant 8 : index
    %c0_58 = arith.constant 0 : index
    %c0_59 = arith.constant 0 : index
    %70 = vector.load %arg6[%c8, %c0_58, %c0_59] : memref<9x8x128xbf16, #tpu.memory_space<vmem>>, vector<1x8x128xbf16>
    %71 = vector.shape_cast %70 : vector<1x8x128xbf16> to vector<8x128xbf16>
    %cst_60 = arith.constant dense<0.000000e+00> : vector<64x128xf32>
    %72 = tpu.matmul %69, %71, %cst_60 {dimension_numbers = #tpu.dot_dimension_numbers<[1], [0], [0], [1], [0, 0, 1, 1], [], []>} : vector<64x8xbf16>, vector<8x128xbf16>, vector<64x128xf32> -> vector<64x128xf32>
    %73 = arith.addf %65, %72 : vector<64x128xf32>
    %c0_61 = arith.constant 0 : index
    %c0_62 = arith.constant 0 : index
    %74 = vector.load %arg9[%c0_61, %c0_62] : memref<3x128xf32, #tpu.memory_space<vmem>>, vector<3x128xf32>
    %75 = vector.extract_strided_slice %74 {offsets = [0, 0], sizes = [1, 128], strides = [1, 1]} : vector<3x128xf32> to vector<1x128xf32>
    %76 = vector.broadcast %75 : vector<1x128xf32> to vector<64x128xf32>
    %77 = arith.addf %73, %76 : vector<64x128xf32>
    %cst_63 = arith.constant 0.000000e+00 : f32
    %78 = vector.broadcast %cst_63 : f32 to vector<64x128xf32>
    %79 = arith.maximumf %77, %78 : vector<64x128xf32>
    %80 = arith.truncf %79 : vector<64x128xf32> to vector<64x128xbf16>
    %c0_64 = arith.constant 0 : index
    %c0_65 = arith.constant 0 : index
    %81 = vector.load %arg7[%c0_64, %c0_65] : memref<128x128xbf16, #tpu.memory_space<vmem>>, vector<128x128xbf16>
    %cst_66 = arith.constant dense<0.000000e+00> : vector<64x128xf32>
    %82 = tpu.matmul %80, %81, %cst_66 {dimension_numbers = #tpu.dot_dimension_numbers<[1], [0], [0], [1], [0, 0, 1, 1], [], []>} : vector<64x128xbf16>, vector<128x128xbf16>, vector<64x128xf32> -> vector<64x128xf32>
    %83 = vector.extract_strided_slice %74 {offsets = [1, 0], sizes = [1, 128], strides = [1, 1]} : vector<3x128xf32> to vector<1x128xf32>
    %84 = vector.broadcast %83 : vector<1x128xf32> to vector<64x128xf32>
    %85 = arith.addf %82, %84 : vector<64x128xf32>
    %cst_67 = arith.constant 0.000000e+00 : f32
    %86 = vector.broadcast %cst_67 : f32 to vector<64x128xf32>
    %87 = arith.maximumf %85, %86 : vector<64x128xf32>
    %88 = arith.truncf %87 : vector<64x128xf32> to vector<64x128xbf16>
    %c0_68 = arith.constant 0 : index
    %c0_69 = arith.constant 0 : index
    %89 = vector.load %arg8[%c0_68, %c0_69] : memref<128x128xbf16, #tpu.memory_space<vmem>>, vector<128x128xbf16>
    %cst_70 = arith.constant dense<0.000000e+00> : vector<64x128xf32>
    %90 = tpu.matmul %88, %89, %cst_70 {dimension_numbers = #tpu.dot_dimension_numbers<[1], [0], [0], [1], [0, 0, 1, 1], [], []>} : vector<64x128xbf16>, vector<128x128xbf16>, vector<64x128xf32> -> vector<64x128xf32>
    %91 = vector.extract_strided_slice %74 {offsets = [2, 0], sizes = [1, 128], strides = [1, 1]} : vector<3x128xf32> to vector<1x128xf32>
    %92 = vector.broadcast %91 : vector<1x128xf32> to vector<64x128xf32>
    %93 = arith.addf %90, %92 : vector<64x128xf32>
    %cst_71 = arith.constant 0.000000e+00 : f32
    %94 = vector.broadcast %cst_71 : f32 to vector<64x128xf32>
    %95 = arith.maximumf %93, %94 : vector<64x128xf32>
    %96 = vector.shape_cast %95 : vector<64x128xf32> to vector<1x8x8x128xf32>
    %c0_72 = arith.constant 0 : index
    %c0_73 = arith.constant 0 : index
    %c0_74 = arith.constant 0 : index
    %c0_75 = arith.constant 0 : index
    %97 = vector.load %arg10[%c0_72, %c0_73, %c0_74, %c0_75] : memref<1x8x8x128xf32, #tpu.memory_space<vmem>>, vector<1x8x8x128xf32>
    tpu.vector_store %arg10[%c0_72, %c0_73, %c0_74, %c0_75], %96 {strides = array<i32>} : memref<1x8x8x128xf32, #tpu.memory_space<vmem>>, vector<1x8x8x128xf32>,
    return
  }
  func.func @transform_0(%arg0: i32, %arg1: i32) -> (i32, i32, i32, i32) {
    %c0_i32 = arith.constant 0 : i32
    %c0_i32_0 = arith.constant 0 : i32
    %c0_i32_1 = arith.constant 0 : i32
    %c0_i32_2 = arith.constant 0 : i32
    return %arg0, %c0_i32, %c0_i32_0, %c0_i32_1 : i32, i32, i32, i32
  }
  func.func @transform_1(%arg0: i32, %arg1: i32) -> (i32, i32, i32, i32) {
    %c0_i32 = arith.constant 0 : i32
    %c0_i32_0 = arith.constant 0 : i32
    %c0_i32_1 = arith.constant 0 : i32
    %c0_i32_2 = arith.constant 0 : i32
    return %arg0, %c0_i32, %c0_i32_0, %c0_i32_1 : i32, i32, i32, i32
  }
  func.func @transform_2(%arg0: i32, %arg1: i32) -> (i32, i32, i32, i32) {
    %c0_i32 = arith.constant 0 : i32
    %c0_i32_0 = arith.constant 0 : i32
    %c0_i32_1 = arith.constant 0 : i32
    %c0_i32_2 = arith.constant 0 : i32
    return %arg0, %c0_i32, %c0_i32_0, %c0_i32_1 : i32, i32, i32, i32
  }
  func.func @transform_3(%arg0: i32, %arg1: i32) -> (i32, i32, i32, i32) {
    %c0_i32 = arith.constant 0 : i32
    %c0_i32_0 = arith.constant 0 : i32
    %c0_i32_1 = arith.constant 0 : i32
    %c0_i32_2 = arith.constant 0 : i32
    return %arg0, %c0_i32, %c0_i32_0, %c0_i32_1 : i32, i32, i32, i32
  }
  func.func @transform_4(%arg0: i32, %arg1: i32) -> (i32, i32, i32) {
    %c0_i32 = arith.constant 0 : i32
    %c0_i32_0 = arith.constant 0 : i32
    %c0_i32_1 = arith.constant 0 : i32
    %c0_i32_2 = arith.constant 0 : i32
    return %c0_i32, %c0_i32_0, %c0_i32_1 : i32, i32, i32
  }
  func.func @transform_5(%arg0: i32, %arg1: i32) -> (i32, i32) {
    %c0_i32 = arith.constant 0 : i32
    %c0_i32_0 = arith.constant 0 : i32
    %c0_i32_1 = arith.constant 0 : i32
    return %c0_i32, %c0_i32_0 : i32, i32
  }
  func.func @transform_6(%arg0: i32, %arg1: i32) -> (i32, i32) {
    %c0_i32 = arith.constant 0 : i32
    %c0_i32_0 = arith.constant 0 : i32
    %c0_i32_1 = arith.constant 0 : i32
    return %c0_i32, %c0_i32_0 : i32, i32
  }
  func.func @transform_7(%arg0: i32, %arg1: i32) -> (i32, i32) {
    %c0_i32 = arith.constant 0 : i32
    %c0_i32_0 = arith.constant 0 : i32
    %c0_i32_1 = arith.constant 0 : i32
    return %c0_i32, %c0_i32_0 : i32, i32
  }
  func.func @transform_8(%arg0: i32, %arg1: i32) -> (i32, i32, i32, i32) {
    %c0_i32 = arith.constant 0 : i32
    %c0_i32_0 = arith.constant 0 : i32
    %c0_i32_1 = arith.constant 0 : i32
    return %arg0, %arg1, %c0_i32, %c0_i32_0 : i32, i32, i32, i32
  }
}

</mosaic_0001>

<bundles_post_ra>
// kernel: tpu_custom_call.1
= control target key start
LH: loop header
LB: loop body
LE: loop exit
PB: predicated region body
PF: predicated region fallthrough
CT: control target
= control target key end

     0   :  { %13 = vsyncpa [#allocation3], 0  ;;  %s3268_s0 = inlined_call_operand.vmem [shape: bf16[2,9,9,8], index: 0, kind: input, shape index: {}]   ;;  %s3269_s1 = inlined_call_operand.vmem [shape: bf16[2,9,9,8], index: 1, kind: input, shape index: {}]   ;;  %s3270_s2 = inlined_call_operand.vmem [shape: bf16[2,9,9,8], index: 2, kind: input, shape index: {}]   ;;  %s3271_s3 = inlined_call_operand.vmem [shape: bf16[2,9,9,8], index: 3, kind: input, shape index: {}]   ;;  %s3272_s4 = inlined_call_operand.vmem [shape: bf16[9,8,128], index: 4, kind: input, shape index: {}]   ;;  %s3273_s5 = inlined_call_operand.vmem [shape: bf16[128,128], index: 5, kind: input, shape index: {}]   ;;  %s3274_s6 = inlined_call_operand.vmem [shape: bf16[128,128], index: 6, kind: input, shape index: {}]   ;;  %s3275_s7 = inlined_call_operand.vmem [shape: f32[3,128], index: 7, kind: input, shape index: {}]   ;;  %s3276_s8 = inlined_call_operand.hbm [shape: f32[2,8,8,128], index: 8, kind: output, shape index: {}]  }
   0x1   :  { %15 = vsyncpa [#allocation3 + $0x1], 0  ;;  %s2829_s27 = smov 0   ;;  %s2831_s28 = smov 0  }
   0x2   :  { %s2833_s29 = smov 0   ;;  %s2835_s30 = smov 0  }
   0x3   :  { %s2837_s9 = smov 0   ;;  %s2839_s10 = smov 0  }
   0x4 LB: > { %s2242_s11 = sadd.s32 4294967295, %s2779_s10   ;;  %s2243_s12 = sadd.s32 4294967294, %s2779_s10   ;;  %s2779_s10 = sphi %s2839_s10, %s21_s10   ;;  %s2775_s9 = sphi %s2837_s9, %s3285_s9   ;;  %s2771_s30 = sphi %s2835_s30, %s3284_s30   ;;  %s2767_s29 = sphi %s2833_s29, %s3283_s29   ;;  %s2763_s28 = sphi %s2831_s28, %s3282_s28   ;;  %s2759_s27 = sphi %s2829_s27, %s3281_s27  }
   0x5   : > { %s33_s13 = sadd.s32 1, %s2775_s9  ;;  %s230_s14 = sadd.s32 1, %s2767_s29 }
   0x6   : > { %p35_p0 = scmp.ge.s32.totalorder %s33_s13, 2  ;;  %p240_p1 = scmp.ne.s32.totalorder %s2767_s29, %s2763_s28 }
   0x7   : > { %p241_p2 = scmp.eq.s32.totalorder %s2242_s11, 1  ;;  %p246_p3 = scmp.ne.s32.totalorder %s2763_s28, %s2759_s27 }
   0x8   : > { %s3287_s13 = smov (%p35_p0, %s33_s13), 0  ;;  %p247_p5 = scmp.eq.s32.totalorder %s2243_s12, 1 }
   0x9   : > { %p2869_p4 = por %p241_p2, %p240_p1  ;;  %s225_s16 = ssub.s32 %s2775_s9, %s3287_s13 }
   0xa   : > { %p2246_p6 = scmp.ge.s32.totalorder %s2779_s10, 1  ;;  %p228_p7 = scmp.eq.s32.totalorder %s225_s16, 0 }
   0xb   : > { %p2876_p8 = por %p247_p5, %p246_p3  ;;  %p309_p9 = scmp.lt.s32.totalorder %s2779_s10, 3 }
   0xc   : > { %s2882_s18 = scalar_select %p228_p7, %s2767_s29, %s230_s14  }
   0xd   : > { %p310_p10 = pnand %p2246_p6, %p309_p9 }
   0xe   : > { %p358_p11 = scmp.lt.s32.totalorder (!%p310_p10), %s2771_s30, 1 }
   0xf   : > { %313 = sbr.rel (%p310_p10) target bundleno = 733 (0x2dd), region = 52 }
  0x14   : > { %v2252_v0 = vld [vmem:[%s3272_s4 + $0x4] sm:$0xf]  ;;  %vm438_vm0 = vcmask 1043456   ;;  %v392_v2 = vld [vmem:[%s3272_s4] sm:$0xf]  ;;  %s359_s25 = scalar_select %p358_p11, %s2771_s30, 1 }
  0x15   : > { %2596 = vmatprep.subr.msk.bf16.mxu1 %vm438_vm0, %v2252_v0  ;;  %2595 = vmatprep.subr.msk.bf16.mxu0 %vm438_vm0, %v2252_v0  ;;  %v440_v1 = vsel %vm438_vm0, %v2252_v0, 0  ;;  %v2269_v3 = vld [vmem:[%s3272_s4 + $0x8] sm:$0xf]  ;;  %vm425_vm1 = vcmask 64512   ;;  %v540_v4 = vsel %vm438_vm0, %v392_v2, 0 }
  0x16   : > { %2594 = vmatpush3.bf16.msra.mxu1 %v440_v1  ;;  %2456 = vmatpush3.bf16.msra.mxu0 %v440_v1  ;;  %s2900_s26 = smul.u32 72, %s359_s25  ;;  %v765_v5 = vsel %vm438_vm0, %v2269_v3, 0  ;;  %v2278_v7 = vld [vmem:[%s3272_s4 + $0xc] sm:$0xf]  ;;  %v2287_v8 = vld [vmem:[%s3272_s4 + $0x10] sm:$0xf] }
  0x17   : > { %2597 = vmatprep.subr.msk.bf16.mxu1 %vm438_vm0, %v392_v2  ;;  %2598 = vmatprep.subr.msk.bf16.mxu0 %vm438_vm0, %v2269_v3  ;;  %vm623_vm2 = vsmask.f32 3328  ;;  %vm624_vm3 = vsmask.f32 7440  ;;  %v885_v13 = vsel %vm438_vm0, %v2278_v7, 0  ;;  %v2933_v14 = vsel %vm438_vm0, %v2287_v8, 0 }
  0x18   : > { %s2906_s14 = scalar_lea.vmem %s3269_s1, %s2900_s26  ;;  %s2924_s24 = scalar_lea.vmem %s3268_s0, %s2900_s26  ;;  %v2950_v38 = vld [vmem:[%s3272_s4 + $0x14] sm:$0xf]  ;;  %vm2954_vm4 = vmor %vm623_vm2, %vm624_vm3  ;;  %v2689_v43 = vld [vmem:[%s3273_s5 + $0x28] sm:$0xff]  }
  0x19   : > { %v2663_v6 = vld [vmem:[%s2906_s14] ss:$8 sps:$4 sm:$0xff]   ;;  %v2665_v10 = vld [vmem:[%s2906_s14 + $0x10] ss:$8 sps:$4 sm:$0xff]   ;;  %v608_v16 = vld [vmem:[%s2924_s24 + $0x4] sm:$0x1]  ;;  %s2987_s21 = scalar_lea.vmem %s3270_s2, %s2900_s26  ;;  %s3003_s25 = scalar_lea.vmem %s3271_s3, %s2900_s26 }
  0x1a   : > { %v2664_v9 = vld [vmem:[%s2906_s14 + $0x20] ss:$8 sps:$4 sm:$0xff]   ;;  %2457 = vmatprep.mubr.msk.bf16.mxu0 %vm425_vm1, %v2663_v6  ;;  %v2666_v11 = vld [vmem:[%s2906_s14 + $0x30] ss:$8 sps:$4 sm:$0xff]   ;;  %v610_v19 = vld [vmem:[%s2924_s24 + $0xc] sm:$0x1] }
  0x1b   : > { %2461 = vmatprep.mubr.msk.bf16.mxu1 %vm425_vm1, %v2664_v9  ;;  %2458 = vmatmul.mubr.msk.bf16.vlgmr.msra.gmra.mxu0 %vm425_vm1, %v2665_v10  ;;  %v2667_v12 = vld [vmem:[%s2924_s24] ss:$8 sps:$4 sm:$0xff]   ;;  %v2668_v18 = vld [vmem:[%s2924_s24 + $0x10] ss:$8 sps:$4 sm:$0xff]   ;;  %v636_v22 = vshll.u32 %v608_v16, 16  ;;  %v650_v25 = vshll.u32 %v610_v19, 16 }
  0x1c   : > { %2462 = vmatmul.mubr.msk.bf16.vlgmr.msra.gmra.mxu1 %vm425_vm1, %v2666_v11  ;;  %2476 = vmatpush3.bf16.msra.mxu0 %v765_v5  ;;  %v607_v15 = vld [vmem:[%s2924_s24] sm:$0xf]  ;;  %v609_v17 = vld [vmem:[%s2924_s24 + $0x8] sm:$0xf]  ;;  %v611_v26 = vld [vmem:[%s2924_s24 + $0x10] sm:$0xf] }
  0x1d   : > { %2466 = vmatpush3.bf16.msra.mxu1 %v540_v4  ;;  %2467 = vmatprep.mubr.msk.bf16.mxu1 %vm425_vm1, %v2667_v12  ;;  %v627_v20 = vshrl.u32 %v607_v15, 16  ;;  %v630_v21 = vshll.u32 %v607_v15, 16  ;;  %v641_v23 = vshrl.u32 %v609_v17, 16  ;;  %v644_v24 = vshll.u32 %v609_v17, 16  ;;  %v612_v27 = vld [vmem:[%s2924_s24 + $0x14] sm:$0x1] }
  0x1e   : > { %2599 = vmatprep.subr.msk.bf16.mxu1 %vm438_vm0, %v2278_v7  ;;  %2600 = vmatprep.subr.msk.bf16.mxu0 %vm438_vm0, %v2287_v8  ;;  %v638_v30 = vrot.slane %v636_v22, 5  ;;  %v613_v32 = vld [vmem:[%s2924_s24 + $0x18] sm:$0xf]  ;;  %v652_v34 = vrot.slane %v650_v25, 5  ;;  %v614_v35 = vld [vmem:[%s2924_s24 + $0x1c] sm:$0x1] }
  0x1f   : > { %v629_v28 = vrot.slane %v627_v20, 4  ;;  %v632_v29 = vrot.slane %v630_v21, 5  ;;  %v643_v31 = vrot.slane %v641_v23, 4  ;;  %v646_v33 = vrot.slane %v644_v24, 5  ;;  %v2669_v52 = vld [vmem:[%s2924_s24 + $0x20] ss:$8 sps:$4 sm:$0xff]  }
  0x20   : > { %v655_v36 = vshrl.u32 %v611_v26, 16  ;;  %v658_v37 = vshll.u32 %v611_v26, 16  ;;  %v664_v40 = vshll.u32 %v612_v27, 16  ;;  %v669_v41 = vshrl.u32 %v613_v32, 16  ;;  %v2670_v58 = vld [vmem:[%s2924_s24 + $0x30] ss:$8 sps:$4 sm:$0xff]  }
  0x21   : > { %v633_v39 = vor.u32 %v632_v29, %v629_v28  ;;  %v672_v42 = vshll.u32 %v613_v32, 16  ;;  %v647_v44 = vor.u32 %v646_v33, %v643_v31  ;;  %v678_v47 = vshll.u32 %v614_v35, 16  ;;  %v615_v59 = vld [vmem:[%s2924_s24 + $0x20] sm:$0xf]  ;;  %v616_v60 = vld [vmem:[%s2924_s24 + $0x24] sm:$0x1] }
  0x22   : > { %v657_v45 = vrot.slane %v655_v36, 4  ;;  %v660_v46 = vrot.slane %v658_v37, 5  ;;  %v666_v49 = vrot.slane %v664_v40, 5  ;;  %v671_v50 = vrot.slane %v669_v41, 4  ;;  %v617_v63 = vld [vmem:[%s2924_s24 + $0x28] sm:$0xf] }
  0x23   : > { %v634_v48 = vrot.slane %v633_v39, 4  ;;  %v674_v51 = vrot.slane %v672_v42, 5  ;;  %v648_v53 = vrot.slane %v647_v44, 4  ;;  %v680_v55 = vrot.slane %v678_v47, 5  ;;  %v618_v0 = vld [vmem:[%s2924_s24 + $0x2c] sm:$0x1] }
  0x24   : > { %2468 = vmatmul.mubr.msk.bf16.vlgmr.msra.gmra.mxu1 %vm425_vm1, %v2668_v18  ;;  %v661_v54 = vor.u32 %v660_v46, %v657_v45  ;;  %v683_v1 = vshrl.u32 %v615_v59, 16  ;;  %v686_v4 = vshll.u32 %v615_v59, 16  ;;  %v692_v5 = vshll.u32 %v616_v60, 16  ;;  %v619_v6 = vld [vmem:[%s2924_s24 + $0x30] sm:$0xf]  ;;  %s355_s26 = sand.u32 1, %s2763_s28  }
  0x25   : > { %2486 = vmatpush3.bf16.msra.mxu1 %v885_v13  ;;  %v639_v56 = vsel %vm2954_vm4, %v634_v48, %v638_v30  ;;  %v675_v57 = vor.u32 %v674_v51, %v671_v50  ;;  %2471 = vmatprep.mubr.msk.bf16.mxu1 %vm425_vm1, %v2669_v52  ;;  %v653_v61 = vsel %vm2954_vm4, %v648_v53, %v652_v34  ;;  %v697_v9 = vshrl.u32 %v617_v63, 16  ;;  %v620_v11 = vld [vmem:[%s2924_s24 + $0x34] sm:$0x1]  ;;  %v621_v17 = vld [vmem:[%s2924_s24 + $0x38] sm:$0xf]  ;;  %s2247_s16 = sshll.u32 %s355_s26, 6 }
  0x26   : > { %2601 = vmatprep.subr.msk.bf16.mxu1 %vm438_vm0, %v2950_v38  ;;  %v662_v62 = vrot.slane %v661_v54, 4  ;;  %v2270_v2 = vcombine.low %v639_v56, %v653_v61  ;;  %v685_v8 = vrot.slane %v683_v1, 4  ;;  %v700_v10 = vshll.u32 %v617_v63, 16  ;;  %v2313_v18 = vld [vmem:[%s3272_s4 + $0x18] sm:$0xf] }
  0x27   : > { %v676_v3 = vrot.slane %v675_v57, 4  ;;  %v688_v13 = vrot.slane %v686_v4, 5  ;;  %v694_v15 = vrot.slane %v692_v5, 5  ;;  %v706_v16 = vshll.u32 %v618_v0, 16  ;;  %v622_v22 = vld [vmem:[%s2924_s24 + $0x3c] sm:$0x1] }
  0x28   : > { %v667_v7 = vsel %vm2954_vm4, %v662_v62, %v666_v49  ;;  %2477 = vmatprep.mubr.msk.bf16.mxu0 %vm425_vm1, %v2270_v2  ;;  %v699_v20 = vrot.slane %v697_v9, 4  ;;  %v702_v21 = vrot.slane %v700_v10, 5  ;;  %v711_v23 = vshrl.u32 %v619_v6, 16  ;;  %v2671_v35 = vld [vmem:[%s2987_s21] ss:$8 sps:$4 sm:$0xff]  }
  0x29   : > { %v681_v12 = vsel %vm2954_vm4, %v676_v3, %v680_v55  ;;  %v689_v24 = vor.u32 %v688_v13, %v685_v8  ;;  %v708_v25 = vrot.slane %v706_v16, 5  ;;  %v714_v26 = vshll.u32 %v619_v6, 16  ;;  %v2672_v44 = vld [vmem:[%s2987_s21 + $0x10] ss:$8 sps:$4 sm:$0xff]   ;;  %v2330_v51 = vld [vmem:[%s3272_s4 + $0x1c] sm:$0xf] }
  0x2a   : > { %v2271_v19 = vcombine.low %v667_v7, %v681_v12  ;;  %v720_v27 = vshll.u32 %v620_v11, 16  ;;  %v703_v28 = vor.u32 %v702_v21, %v699_v20  ;;  %v713_v29 = vrot.slane %v711_v23, 4  ;;  %v2675_v53 = vld [vmem:[%s2987_s21 + $0x20] ss:$8 sps:$4 sm:$0xff]   ;;  %v2676_v57 = vld [vmem:[%s2987_s21 + $0x30] ss:$8 sps:$4 sm:$0xff]  }
  0x2b   : > { %v725_v30 = vshrl.u32 %v621_v17, 16  ;;  %v728_v31 = vshll.u32 %v621_v17, 16  ;;  %v690_v32 = vrot.slane %v689_v24, 4  ;;  %v716_v33 = vrot.slane %v714_v26, 5  ;;  %v1081_v59 = vld [vmem:[%s2987_s21 + $0x4] sm:$0x1] }
  0x2c   : > { %2472 = vmatmul.mubr.msk.bf16.gmra.mxu1 %vm425_vm1, %v2670_v58  ;;  %2478 = vmatmul.mubr.msk.bf16.vlgmr.msra.gmra.mxu0 %vm425_vm1, %v2271_v19  ;;  %v734_v34 = vshll.u32 %v622_v22, 16  ;;  %v704_v36 = vrot.slane %v703_v28, 4  ;;  %v722_v42 = vrot.slane %v720_v27, 5  ;;  %v1235_v49 = vsel %vm438_vm0, %v2950_v38, 0  ;;  %v2673_v38 = vld [vmem:[%s3003_s25] ss:$8 sps:$4 sm:$0xff]  }
  0x2d   : > { %2496 = vmatpush3.bf16.msra.mxu0 %v2933_v14  ;;  %v727_v37 = vrot.slane %v725_v30, 4  ;;  %v730_v39 = vrot.slane %v728_v31, 5  ;;  %v695_v40 = vsel %vm2954_vm4, %v690_v32, %v694_v15  ;;  %v717_v41 = vor.u32 %v716_v33, %v713_v29  ;;  %2487 = vmatprep.mubr.msk.bf16.mxu1 %vm425_vm1, %v2671_v35  ;;  %v1080_v58 = vld [vmem:[%s2987_s21] sm:$0xf]  ;;  %v1082_v60 = vld [vmem:[%s2987_s21 + $0x8] sm:$0xf] }
  0x2e   : > { %2602 = vmatprep.subr.msk.bf16.mxu0 %vm438_vm0, %v2313_v18  ;;  %v709_v14 = vsel %vm2954_vm4, %v704_v36, %v708_v25  ;;  %v736_v46 = vrot.slane %v734_v34, 5  ;;  %v1357_v56 = vsel %vm438_vm0, %v2313_v18, 0  ;;  %v1083_v61 = vld [vmem:[%s2987_s21 + $0xc] sm:$0x1]  ;;  %v1097_v62 = vshrl.u32 %v1080_v58, 16 }
  0x2f   : > { %v731_v45 = vor.u32 %v730_v39, %v727_v37  ;;  %v2272_v47 = vcombine.low %v695_v40, %v709_v14  ;;  %v718_v48 = vrot.slane %v717_v41, 4  ;;  %v1100_v63 = vshll.u32 %v1080_v58, 16  ;;  %v1084_v2 = vld [vmem:[%s2987_s21 + $0x10] sm:$0xf]  ;;  %v1085_v6 = vld [vmem:[%s2987_s21 + $0x14] sm:$0x1] }
  0x30   : > { %v1106_v0 = vshll.u32 %v1081_v59, 16  ;;  %v1111_v1 = vshrl.u32 %v1082_v60, 16  ;;  %v2674_v3 = vld [vmem:[%s3003_s25 + $0x10] ss:$8 sps:$4 sm:$0xff]   ;;  %v1114_v4 = vshll.u32 %v1082_v60, 16  ;;  %v1120_v5 = vshll.u32 %v1083_v61, 16 }
  0x31   : > { %v732_v50 = vrot.slane %v731_v45, 4  ;;  %2481 = vmatprep.mubr.msk.bf16.mxu0 %vm425_vm1, %v2272_v47  ;;  %v723_v52 = vsel %vm2954_vm4, %v718_v48, %v722_v42  ;;  %v1086_v7 = vld [vmem:[%s2987_s21 + $0x18] sm:$0xf]  ;;  %v2677_v8 = vld [vmem:[%s3003_s25 + $0x20] ss:$8 sps:$4 sm:$0xff]   ;;  %v1099_v9 = vrot.slane %v1097_v62, 4 }
  0x32   : > { %v1102_v10 = vrot.slane %v1100_v63, 5  ;;  %v1108_v11 = vrot.slane %v1106_v0, 5  ;;  %v1113_v12 = vrot.slane %v1111_v1, 4  ;;  %v1087_v13 = vld [vmem:[%s2987_s21 + $0x1c] sm:$0x1]  ;;  %v1116_v15 = vrot.slane %v1114_v4, 5 }
  0x33   : > { %v737_v54 = vsel %vm2954_vm4, %v732_v50, %v736_v46  ;;  %v1122_v16 = vrot.slane %v1120_v5, 5  ;;  %v1125_v17 = vshrl.u32 %v1084_v2, 16  ;;  %v1128_v18 = vshll.u32 %v1084_v2, 16  ;;  %v3040_v27 = vld [vmem:[%s3272_s4 + $0x20] sm:$0xf] }
  0x34   : > { %2488 = vmatmul.mubr.msk.bf16.vlgmr.msra.gmra.mxu1 %vm425_vm1, %v2672_v44  ;;  %v2273_v55 = vcombine.low %v723_v52, %v737_v54  ;;  %v1103_v19 = vor.u32 %v1102_v10, %v1099_v9  ;;  %v1134_v20 = vshll.u32 %v1085_v6, 16  ;;  %v1139_v21 = vshrl.u32 %v1086_v7, 16  ;;  %v1088_v39 = vld [vmem:[%s2987_s21 + $0x20] sm:$0xf]  ;;  %v1089_v40 = vld [vmem:[%s2987_s21 + $0x24] sm:$0x1] }
  0x35   : > { %2506 = vmatpush3.bf16.msra.mxu1 %v1235_v49  ;;  %2491 = vmatprep.mubr.msk.bf16.mxu1 %vm425_vm1, %v2675_v53  ;;  %v1142_v22 = vshll.u32 %v1086_v7, 16  ;;  %v1117_v23 = vor.u32 %v1116_v15, %v1113_v12  ;;  %v1127_v24 = vrot.slane %v1125_v17, 4  ;;  %v1130_v25 = vrot.slane %v1128_v18, 5  ;;  %v1090_v41 = vld [vmem:[%s2987_s21 + $0x28] sm:$0xf] }
  0x36   : > { %2603 = vmatprep.subr.msk.bf16.mxu1 %vm438_vm0, %v2330_v51  ;;  %2482 = vmatmul.mubr.msk.bf16.gmra.mxu0 %vm425_vm1, %v2273_v55  ;;  %v1148_v26 = vshll.u32 %v1087_v13, 16  ;;  %v1104_v28 = vrot.slane %v1103_v19, 4  ;;  %v1141_v29 = vrot.slane %v1139_v21, 4  ;;  %v1477_v31 = vsel %vm438_vm0, %v2330_v51, 0  ;;  %v2678_v42 = vld [vmem:[%s3003_s25 + $0x30] ss:$8 sps:$4 sm:$0xff]  }
  0x37   : > { %2497 = vmatprep.mubr.msk.bf16.mxu0 %vm425_vm1, %v2673_v38  ;;  %v1144_v30 = vrot.slane %v1142_v22, 5  ;;  %v1118_v32 = vrot.slane %v1117_v23, 4  ;;  %v1131_v33 = vor.u32 %v1130_v25, %v1127_v24  ;;  %v1136_v34 = vrot.slane %v1134_v20, 5  ;;  %v1091_v45 = vld [vmem:[%s2987_s21 + $0x2c] sm:$0x1]  ;;  %s2781_s25 = smov [#allocation2]  }
  0x38   : > { %v1150_v35 = vrot.slane %v1148_v26, 5  ;;  %v1109_v36 = vsel %vm2954_vm4, %v1104_v28, %v1108_v11  ;;  %v1153_v46 = vshrl.u32 %v1088_v39, 16  ;;  %v1156_v47 = vshll.u32 %v1088_v39, 16  ;;  %v2679_v50 = vld [vmem:[%s2924_s24 + $0x8] ss:$8 sps:$4 sm:$0xff]   ;;  %s2707_s11 = sshll.u32 %s2781_s25, 4  ;;  %s2708_s11 = int_to_ptr.vmem [resolvable:$false] %s2707_s11 }
  0x39   : > { %v1145_v37 = vor.u32 %v1144_v30, %v1141_v29  ;;  %v1123_v44 = vsel %vm2954_vm4, %v1118_v32, %v1122_v16  ;;  %v1132_v14 = vrot.slane %v1131_v33, 4  ;;  %v1162_v51 = vshll.u32 %v1089_v40, 16  ;;  %v1092_v53 = vld [vmem:[%s2987_s21 + $0x30] sm:$0xf]  ;;  %v1094_v62 = vld [vmem:[%s2987_s21 + $0x38] sm:$0xf] }
  0x3a   : > { %v2297_v48 = vcombine.low %v1109_v36, %v1123_v44  ;;  %v1167_v52 = vshrl.u32 %v1090_v41, 16  ;;  %v1155_v38 = vrot.slane %v1153_v46, 4  ;;  %v1158_v55 = vrot.slane %v1156_v47, 5  ;;  %v1095_v2 = vld [vmem:[%s2987_s21 + $0x3c] sm:$0x1]  ;;  %s2709_s12 = scalar_lea.vmem %s2708_s11, 2048 }
  0x3b   : > { %v1146_v49 = vrot.slane %v1145_v37, 4  ;;  %v1137_v54 = vsel %vm2954_vm4, %v1132_v14, %v1136_v34  ;;  %v1164_v59 = vrot.slane %v1162_v51, 5  ;;  %v1176_v61 = vshll.u32 %v1091_v45, 16  ;;  %v2680_v16 = vld [vmem:[%s2924_s24 + $0x18] ss:$8 sps:$4 sm:$0xff]  }
  0x3c   : > { %2492 = vmatmul.mubr.msk.bf16.gmra.mxu1 %vm425_vm1, %v2676_v57  ;;  %v1093_v57 = vld [vmem:[%s2987_s21 + $0x34] sm:$0x1]  ;;  %v1169_v60 = vrot.slane %v1167_v52, 4  ;;  %v1159_v0 = vor.u32 %v1158_v55, %v1155_v38  ;;  %v1184_v5 = vshll.u32 %v1092_v53, 16  ;;  %v1195_v7 = vshrl.u32 %v1094_v62, 16 }
  0x3d   : > { %2507 = vmatprep.mubr.msk.bf16.mxu1 %vm425_vm1, %v2297_v48  ;;  %v1151_v58 = vsel %vm2954_vm4, %v1146_v49, %v1150_v35  ;;  %v1178_v4 = vrot.slane %v1176_v61, 5  ;;  %v1190_v6 = vshll.u32 %v1093_v57, 16  ;;  %v1198_v11 = vshll.u32 %v1094_v62, 16  ;;  %v2681_v29 = vld [vmem:[%s2924_s24 + $0x28] ss:$8 sps:$4 sm:$0xff]  }
  0x3e   : > { %2498 = vmatmul.mubr.msk.bf16.vlgmr.msra.gmra.mxu0 %vm425_vm1, %v2674_v3  ;;  %v2298_v63 = vcombine.low %v1137_v54, %v1151_v58  ;;  %v1181_v3 = vshrl.u32 %v1092_v53, 16  ;;  %v1186_v12 = vrot.slane %v1184_v5, 5  ;;  %v1197_v13 = vrot.slane %v1195_v7, 4  ;;  %v2339_v30 = vld [vmem:[%s2924_s24 + $0x8] sm:$0xf] }
  0x3f   : > { %2516 = vmatpush3.bf16.msra.mxu0 %v1357_v56  ;;  %2501 = vmatprep.mubr.msk.bf16.mxu0 %vm425_vm1, %v2677_v8  ;;  %v1170_v56 = vshll.u32 %v1090_v41, 16  ;;  %v1160_v8 = vrot.slane %v1159_v0, 4  ;;  %v1204_v15 = vshll.u32 %v1095_v2, 16  ;;  %v1200_v19 = vrot.slane %v1198_v11, 5  ;;  %v2683_v32 = vld [vmem:[%s2906_s14 + $0x8] ss:$8 sps:$4 sm:$0xff]  }
  0x40   : > { %2604 = vmatprep.subr.msk.bf16.mxu0 %vm438_vm0, %v3040_v27  ;;  %v1183_v10 = vrot.slane %v1181_v3, 4  ;;  %v1192_v21 = vrot.slane %v1190_v6, 5  ;;  %v1707_v25 = vsel %vm438_vm0, %v3040_v27, 0  ;;  %v2340_v33 = vld [vmem:[%s2924_s24 + $0xc] sm:$0x1]  ;;  %v1569_v35 = vshrl.u32 %v2339_v30, 16 }
  0x41   : > { %v1172_v1 = vrot.slane %v1170_v56, 5  ;;  %v1165_v17 = vsel %vm2954_vm4, %v1160_v8, %v1164_v59  ;;  %v1201_v23 = vor.u32 %v1200_v19, %v1197_v13  ;;  %v1206_v24 = vrot.slane %v1204_v15, 5  ;;  %v2341_v34 = vld [vmem:[%s2924_s24 + $0x10] sm:$0xf]  ;;  %v2342_v37 = vld [vmem:[%s2924_s24 + $0x14] sm:$0x1] }
  0x42   : > { %v1187_v20 = vor.u32 %v1186_v12, %v1183_v10  ;;  %v1572_v39 = vshll.u32 %v2339_v30, 16  ;;  %v1578_v27 = vshll.u32 %v2340_v33, 16  ;;  %v1583_v40 = vshrl.u32 %v2341_v34, 16  ;;  %v2343_v45 = vld [vmem:[%s2924_s24 + $0x18] sm:$0xf] }
  0x43   : > { %v1173_v9 = vor.u32 %v1172_v1, %v1169_v60  ;;  %v1586_v44 = vshll.u32 %v2341_v34, 16  ;;  %v1592_v14 = vshll.u32 %v2342_v37, 16  ;;  %v2682_v51 = vld [vmem:[%s2924_s24 + $0x38] ss:$8 sps:$4 sm:$0xff]   ;;  %v2346_v38 = vld [vmem:[%s2924_s24 + $0x24] sm:$0x1] }
  0x44   : > { %2508 = vmatmul.mubr.msk.bf16.vlgmr.msra.gmra.mxu1 %vm425_vm1, %v2298_v63  ;;  %v1188_v28 = vrot.slane %v1187_v20, 4  ;;  %v1574_v47 = vrot.slane %v1572_v39, 5  ;;  %v1580_v48 = vrot.slane %v1578_v27, 5  ;;  %v1585_v49 = vrot.slane %v1583_v40, 4  ;;  %v2345_v54 = vld [vmem:[%s2924_s24 + $0x20] sm:$0xf] }
  0x45   : > { %2526 = vmatpush3.bf16.msra.mxu1 %v1477_v31  ;;  %v1174_v18 = vrot.slane %v1173_v9, 4  ;;  %v1202_v31 = vrot.slane %v1201_v23, 4  ;;  %v1588_v52 = vrot.slane %v1586_v44, 5  ;;  %v1594_v53 = vrot.slane %v1592_v14, 5  ;;  %v2684_v63 = vld [vmem:[%s2906_s14 + $0x18] ss:$8 sps:$4 sm:$0xff]  }
  0x46   : > { %2502 = vmatmul.mubr.msk.bf16.gmra.mxu0 %vm425_vm1, %v2678_v42  ;;  %v1193_v36 = vsel %vm2954_vm4, %v1188_v28, %v1192_v21  ;;  %v1571_v42 = vrot.slane %v1569_v35, 4  ;;  %v1597_v56 = vshrl.u32 %v2343_v45, 16  ;;  %v1600_v57 = vshll.u32 %v2343_v45, 16  ;;  %v2685_v6 = vld [vmem:[%s2906_s14 + $0x28] ss:$8 sps:$4 sm:$0xff]  }
  0x47   : > { %2517 = vmatprep.mubr.msk.bf16.mxu0 %vm425_vm1, %v2679_v50  ;;  %v1179_v22 = vsel %vm2954_vm4, %v1174_v18, %v1178_v4  ;;  %v1207_v41 = vsel %vm2954_vm4, %v1202_v31, %v1206_v24  ;;  %v2344_v50 = vld [vmem:[%s2924_s24 + $0x1c] sm:$0x1]  ;;  %v1589_v59 = vor.u32 %v1588_v52, %v1585_v49  ;;  %v1611_v60 = vshrl.u32 %v2345_v54, 16  ;;  %v2347_v11 = vld [vmem:[%s2924_s24 + $0x28] sm:$0xf] }
  0x48   : > { %v2299_v26 = vcombine.low %v1165_v17, %v1179_v22  ;;  %v2300_v46 = vcombine.low %v1193_v36, %v1207_v41  ;;  %v1575_v55 = vor.u32 %v1574_v47, %v1571_v42  ;;  %v1606_v58 = vshll.u32 %v2344_v50, 16  ;;  %v2348_v15 = vld [vmem:[%s2924_s24 + $0x2c] sm:$0x1]  ;;  %v2350_v17 = vld [vmem:[%s2924_s24 + $0x34] sm:$0x1] }
  0x49   : > { %v1614_v61 = vshll.u32 %v2345_v54, 16  ;;  %v1620_v62 = vshll.u32 %v2346_v38, 16  ;;  %v1599_v1 = vrot.slane %v1597_v56, 4  ;;  %v1602_v2 = vrot.slane %v1600_v57, 5  ;;  %v2351_v22 = vld [vmem:[%s2924_s24 + $0x38] sm:$0xf] }
  0x4a   : > { %2511 = vmatprep.mubr.msk.bf16.mxu1 %vm425_vm1, %v2299_v26  ;;  %v1576_v0 = vrot.slane %v1575_v55, 4  ;;  %v1590_v3 = vrot.slane %v1589_v59, 4  ;;  %v1613_v4 = vrot.slane %v1611_v60, 4  ;;  %v1608_v9 = vrot.slane %v1606_v58, 5  ;;  %v2352_v28 = vld [vmem:[%s2924_s24 + $0x3c] sm:$0x1] }
  0x4b   : > { %v1616_v5 = vrot.slane %v1614_v61, 5  ;;  %v1603_v8 = vor.u32 %v1602_v2, %v1599_v1  ;;  %v1622_v10 = vrot.slane %v1620_v62, 5  ;;  %v1625_v20 = vshrl.u32 %v2347_v11, 16  ;;  %v2353_v33 = vld [vmem:[%s2924_s24 + $0x40] sm:$0xf] }
  0x4c   : > { %2512 = vmatmul.mubr.msk.bf16.gmra.mxu1 %vm425_vm1, %v2300_v46  ;;  %v1581_v7 = vsel %vm2954_vm4, %v1576_v0, %v1580_v48  ;;  %v1595_v12 = vsel %vm2954_vm4, %v1590_v3, %v1594_v53  ;;  %v1628_v21 = vshll.u32 %v2347_v11, 16  ;;  %v1634_v24 = vshll.u32 %v2348_v15, 16  ;;  %v2354_v39 = vld [vmem:[%s2924_s24 + $0x44] sm:$0x1]  ;;  %v2686_v40 = vld [vmem:[%s2906_s14 + $0x38] ss:$8 sps:$4 sm:$0xff]  }
  0x4d   : > { %2527 = vmatprep.mubr.msk.bf16.mxu1 %vm425_vm1, %v2683_v32  ;;  %v1617_v13 = vor.u32 %v1616_v5, %v1613_v4  ;;  %v2356_v18 = vcombine.low %v1581_v7, %v1595_v12  ;;  %v1604_v19 = vrot.slane %v1603_v8, 4  ;;  %v1627_v30 = vrot.slane %v1625_v20, 4  ;;  %v2687_v3 = vld [vmem:[%s3273_s5 + $0x38] sm:$0xff]   ;;  %v2688_v4 = vld [vmem:[%s3273_s5 + $0x30] sm:$0xff]   ;;  %v2690_v5 = vld [vmem:[%s3273_s5 + $0x20] sm:$0xff]   ;;  %s357_s14 = scalar_lea.vmem [#allocation2], %s2247_s16 }
  0x4e   : > { %2518 = vmatmul.mubr.msk.bf16.vlgmr.msra.gmra.mxu0 %vm425_vm1, %v2680_v16  ;;  %v2349_v16 = vld [vmem:[%s2924_s24 + $0x30] sm:$0xf]  ;;  %v1630_v31 = vrot.slane %v1628_v21, 5  ;;  %v1648_v32 = vshll.u32 %v2350_v17, 16  ;;  %v1636_v35 = vrot.slane %v1634_v24, 5  ;;  %v1653_v44 = vshrl.u32 %v2351_v22, 16  ;;  %2545 = vmatprep.subr.bf16.mxu1 %v2687_v3 }
  0x4f   : > { %2536 = vmatpush3.bf16.msra.mxu0 %v1707_v25  ;;  %2521 = vmatprep.mubr.msk.bf16.mxu0 %vm425_vm1, %v2681_v29  ;;  %v1618_v23 = vrot.slane %v1617_v13, 4  ;;  %v1639_v25 = vshrl.u32 %v2349_v16, 16  ;;  %v1642_v26 = vshll.u32 %v2349_v16, 16  ;;  %v1609_v29 = vsel %vm2954_vm4, %v1604_v19, %v1608_v9  ;;  %v2692_v7 = vld [vmem:[%s3273_s5 + $0x10] sm:$0xff]   ;;  %v2693_v8 = vld [vmem:[%s3273_s5 + $0x8] sm:$0xff]   ;;  %v2694_v9 = vld [vmem:[%s3273_s5] sm:$0xff]  }
  0x50   : > { %v1631_v41 = vor.u32 %v1630_v31, %v1627_v30  ;;  %v1650_v42 = vrot.slane %v1648_v32, 5  ;;  %v1656_v45 = vshll.u32 %v2351_v22, 16  ;;  %v1662_v46 = vshll.u32 %v2352_v28, 16  ;;  %v2696_v11 = vld [vmem:[%s3274_s6 + $0x30] sm:$0xff]   ;;  %v2697_v12 = vld [vmem:[%s3274_s6 + $0x28] sm:$0xff]   ;;  %v2698_v13 = vld [vmem:[%s3274_s6 + $0x20] sm:$0xff]  }
  0x51   : > { %v1623_v34 = vsel %vm2954_vm4, %v1618_v23, %v1622_v10  ;;  %v1641_v36 = vrot.slane %v1639_v25, 4  ;;  %v1644_v37 = vrot.slane %v1642_v26, 5  ;;  %v1667_v47 = vshrl.u32 %v2353_v33, 16  ;;  %v2695_v10 = vld [vmem:[%s3274_s6 + $0x38] sm:$0xff]   ;;  %s2385_s24 = sshll.u32 %s2771_s30, 10  ;;  %s2117_s19 = sshll.u32 %s357_s14, 4  ;;  %s3219_s19 = int_to_ptr.vmem [resolvable:$true] %s2117_s19 }
  0x52   : > { %v2357_v27 = vcombine.low %v1609_v29, %v1623_v34  ;;  %v1632_v48 = vrot.slane %v1631_v41, 4  ;;  %v1655_v49 = vrot.slane %v1653_v44, 4  ;;  %v1670_v50 = vshll.u32 %v2353_v33, 16  ;;  %2569 = vmatprep.subr.bf16.mxu0 %v2695_v10  ;;  %v2699_v15 = vld [vmem:[%s3274_s6 + $0x18] sm:$0xff]   ;;  %s3217_s22 = scalar_lea.hbm %s3276_s8, %s2385_s24  ;;  %s3223_s30 = scalar_lea.sflag [#allocation3], %s355_s26 }
  0x53   : > { %v1645_v14 = vor.u32 %v1644_v37, %v1641_v36  ;;  %v1658_v53 = vrot.slane %v1656_v45, 5  ;;  %v1664_v54 = vrot.slane %v1662_v46, 5  ;;  %v1669_v38 = vrot.slane %v1667_v47, 4  ;;  %s2703_s23 = scalar_lea.vmem %s3219_s19, 1024  ;;  %p2710_p1 = scmp.lt.s32.totalorder %s3219_s19, %s2708_s11 }
  0x54   : > { %2528 = vmatmul.mubr.msk.bf16.vlgmr.msra.gmra.mxu1 %vm425_vm1, %v2684_v63  ;;  %v1637_v55 = vsel %vm2954_vm4, %v1632_v48, %v1636_v35  ;;  %v1672_v56 = vrot.slane %v1670_v50, 5  ;;  %p2704_p12 = scmp.ne.s32.totalorder %s3219_s19, %s2703_s23  ;;  %p2711_p2 = scmp.lt.s32.totalorder %s2709_s12, %s2703_s23 }
  0x55   : > { %2531 = vmatprep.mubr.msk.bf16.mxu1 %vm425_vm1, %v2685_v6  ;;  %v1646_v52 = vrot.slane %v1645_v14, 4  ;;  %v1659_v59 = vor.u32 %v1658_v53, %v1655_v49  ;;  %2546 = vmatpush3.bf16.msra.mxu1 %v2687_v3  ;;  %v2691_v6 = vld [vmem:[%s3273_s5 + $0x18] sm:$0xff]  }
  0x56   : > { %2522 = vmatmul.mubr.msk.bf16.gmra.mxu0 %vm425_vm1, %v2682_v51  ;;  %v1676_v51 = vshll.u32 %v2354_v39, 16  ;;  %v1673_v61 = vor.u32 %v1672_v56, %v1669_v38  ;;  %2547 = vmatprep.subr.bf16.mxu1 %v2688_v4  ;;  %p2705_p13 = pnand %p2704_p12, %p2869_p4  ;;  %p2712_p3 = por %p2711_p2, %p2710_p1 }
  0x57   : > { %2537 = vmatprep.mubr.msk.bf16.mxu0 %vm425_vm1, %v2356_v18  ;;  %v1651_v58 = vsel %vm2954_vm4, %v1646_v52, %v1650_v42  ;;  %v1660_v62 = vrot.slane %v1659_v59, 4 }
  0x58   : > { %v1678_v57 = vrot.slane %v1676_v51, 5  ;;  %v2358_v60 = vcombine.low %v1637_v55, %v1651_v58  ;;  %v1674_v63 = vrot.slane %v1673_v61, 4  ;;  %p2706_p0 = pneg %p2705_p13 }
  0x59   : > { %v1665_v0 = vsel %vm2954_vm4, %v1660_v62, %v1664_v54  ;;  %2548 = vmatpush3.bf16.msra.mxu1 %v2688_v4 }
  0x5a   : > { %v1679_v1 = vsel %vm2954_vm4, %v1674_v63, %v1678_v57  ;;  %2549 = vmatprep.subr.bf16.mxu1 %v2689_v43  ;;  %p2713_p5 = pnand %p2712_p3, %p2706_p0 }
  0x5b   : > { %v2359_v2 = vcombine.low %v1665_v0, %v1679_v1 }
  0x5c   : > { %2532 = vmatmul.mubr.msk.bf16.gmra.mxu1 %vm425_vm1, %v2686_v40 }
  0x5d   : > { %2550 = vmatpush3.bf16.msra.mxu1 %v2689_v43 }
  0x5e   : > { %2538 = vmatmul.mubr.msk.bf16.vlgmr.msra.gmra.mxu0 %vm425_vm1, %v2357_v27  ;;  %2551 = vmatprep.subr.bf16.mxu1 %v2690_v5 }
  0x5f   : > { %2541 = vmatprep.mubr.msk.bf16.mxu0 %vm425_vm1, %v2358_v60  ;;  %2570 = vmatpush3.bf16.msra.mxu0 %v2695_v10 }
  0x60   : > { %2571 = vmatprep.subr.bf16.mxu0 %v2696_v11 }
  0x61   : > { %2552 = vmatpush3.bf16.msra.mxu1 %v2690_v5 }
  0x62   : > { %2553 = vmatprep.subr.bf16.mxu1 %v2691_v6 }
  0x63   : > { %2572 = vmatpush3.bf16.msra.mxu0 %v2696_v11 }
  0x64   : > { %2573 = vmatprep.subr.bf16.mxu0 %v2697_v12 }
  0x65   : > { %2554 = vmatpush3.bf16.msra.mxu1 %v2691_v6 }
  0x66   : > { %2542 = vmatmul.mubr.msk.bf16.gmra.mxu0 %vm425_vm1, %v2359_v2  ;;  %2555 = vmatprep.subr.bf16.mxu1 %v2692_v7 }
  0x67   : > { %2574 = vmatpush3.bf16.msra.mxu0 %v2697_v12 }
  0x68   : > { %2575 = vmatprep.subr.bf16.mxu0 %v2698_v13 }
  0x69   : > { %2556 = vmatpush3.bf16.msra.mxu1 %v2692_v7 }
  0x6a   : > { %2557 = vmatprep.subr.bf16.mxu1 %v2693_v8 }
  0x6b   : > { %2576 = vmatpush3.bf16.msra.mxu0 %v2698_v13 }
  0x6c   : > { %2577 = vmatprep.subr.bf16.mxu0 %v2699_v15 }
  0x6d   : > { %2558 = vmatpush3.bf16.msra.mxu1 %v2693_v8 }
  0x6e   : > { %2559 = vmatprep.subr.bf16.mxu1 %v2694_v9 }
  0x6f   : > { %2578 = vmatpush3.bf16.msra.mxu0 %v2699_v15 }
  0x71   : > { %2560 = vmatpush3.bf16.msra.mxu1 %v2694_v9 }
  0xdb   : > { %v2459_v18 = vpop.f32.mrf.mxu0 }
  0xdc   : > { %v3170_v16 = vpop.f32.mrf.mxu1 }
  0xdd   : > { %v476_v21 = vpop.f32.mrf.mxu0 }
  0xde   : > { %v492_v17 = vpop.f32.mrf.mxu1 }
  0xdf   : > { %v2460_v24 = vpop.f32.mrf.mxu0 }
  0xe0   : > { %v3172_v19 = vpop.f32.mrf.mxu1 }
  0xe1   : > { %v479_v28 = vpop.f32.mrf.mxu0 }
  0xe2   : > { %v3174_v20 = vpop.f32.mrf.mxu1 }
  0xe4   : > { %v2469_v22 = vpop.f32.mrf.mxu1 }
  0xe5   : > { %v585_v59 = vadd.f32 %v2469_v22, %v2459_v18 }
  0xe6   : > { %v576_v23 = vpop.f32.mrf.mxu1 }
  0xe7   : > { %v577_v58 = vadd.f32 %v576_v23, %v476_v21 }
  0xe8   : > { %v2470_v25 = vpop.f32.mrf.mxu1 }
  0xe9   : > { %v588_v61 = vadd.f32 %v2470_v25, %v2460_v24  ;;  %v1783_v24 = vlaneseq }
  0xea   : > { %v579_v26 = vpop.f32.mrf.mxu1 }
  0xeb   : > { %v580_v1 = vadd.f32 %v579_v26, %v479_v28 }
  0xec   : > { %v2473_v29 = vpop.f32.mrf.mxu1  ;;  %v2479_v30 = vpop.f32.mrf.mxu0 }
  0xed   : > { %v834_v2 = vadd.f32 %v2479_v30, %v585_v59  ;;  %v601_v21 = vadd.f32 %v2473_v29, %v3170_v16 }
  0xee   : > { %v592_v31 = vpop.f32.mrf.mxu1  ;;  %v801_v32 = vpop.f32.mrf.mxu0 }
  0xef   : > { %v832_v0 = vadd.f32 %v801_v32, %v577_v58  ;;  %v593_v12 = vadd.f32 %v592_v31, %v492_v17 }
  0xf0   : > { %v2474_v33 = vpop.f32.mrf.mxu1  ;;  %v2480_v34 = vpop.f32.mrf.mxu0 }
  0xf1   : > { %v835_v4 = vadd.f32 %v2480_v34, %v588_v61  ;;  %v604_v25 = vadd.f32 %v2474_v33, %v3172_v19 }
  0xf2   : > { %v595_v35 = vpop.f32.mrf.mxu1  ;;  %v804_v36 = vpop.f32.mrf.mxu0 }
  0xf3   : > { %v833_v8 = vadd.f32 %v804_v36, %v580_v1  ;;  %v596_v32 = vadd.f32 %v595_v35, %v3174_v20 }
  0xf4   : > { %v2489_v37 = vpop.f32.mrf.mxu1 }
  0xf5   : > { %v954_v6 = vadd.f32 %v2489_v37, %v834_v2 }
  0xf6   : > { %v921_v39 = vpop.f32.mrf.mxu1  ;;  %v2483_v27 = vpop.f32.mrf.mxu0 }
  0xf7   : > { %v952_v43 = vadd.f32 %v921_v39, %v832_v0 }
  0xf8   : > { %v2490_v40 = vpop.f32.mrf.mxu1  ;;  %v817_v41 = vpop.f32.mrf.mxu0 }
  0xf9   : > { %v955_v9 = vadd.f32 %v2490_v40, %v835_v4  ;;  %v836_v37 = vadd.f32 %v817_v41, %v593_v12  ;;  %v838_v40 = vadd.f32 %v2483_v27, %v601_v21 }
  0xfa   : > { %v924_v42 = vpop.f32.mrf.mxu1  ;;  %v2484_v44 = vpop.f32.mrf.mxu0 }
  0xfb   : > { %v953_v15 = vadd.f32 %v924_v42, %v833_v8  ;;  %v839_v16 = vadd.f32 %v2484_v44, %v604_v25  ;;  %v3191_v44 = vld [vmem:[%s3275_s7] sm:$0x7] }
  0xfc   : > { %v2493_v14 = vpop.f32.mrf.mxu1  ;;  %v820_v45 = vpop.f32.mrf.mxu0 }
  0xfd   : > { %v837_v33 = vadd.f32 %v820_v45, %v596_v32 }
  0xfe   : > { %v937_v46 = vpop.f32.mrf.mxu1  ;;  %v2499_v47 = vpop.f32.mrf.mxu0 }
  0xff   : > { %v1074_v22 = vadd.f32 %v2499_v47, %v954_v6  ;;  %v956_v29 = vadd.f32 %v937_v46, %v836_v37 }
 0x100   : > { %v2494_v48 = vpop.f32.mrf.mxu1  ;;  %v1041_v49 = vpop.f32.mrf.mxu0 }
 0x101   : > { %v1072_v13 = vadd.f32 %v1041_v49, %v952_v43  ;;  %v3185_v49 = vshrl.u32 %v1783_v24, 7  ;;  %v959_v20 = vadd.f32 %v2494_v48, %v839_v16 }
 0x102   : > { %v2500_v50 = vpop.f32.mrf.mxu0  ;;  %v940_v51 = vpop.f32.mrf.mxu1 }
 0x103   : > { %v1075_v26 = vadd.f32 %v2500_v50, %v955_v9  ;;  %v958_v50 = vadd.f32 %v2493_v14, %v838_v40  ;;  %v1785_v27 = vsub.s32 0, %v3185_v49 }
 0x104   : > { %v1044_v52 = vpop.f32.mrf.mxu0  ;;  %v2509_v54 = vpop.f32.mrf.mxu1 }
 0x105   : > { %v1304_v34 = vadd.f32 %v2509_v54, %v1074_v22  ;;  %v1073_v39 = vadd.f32 %v1044_v52, %v953_v15  ;;  %v957_v52 = vadd.f32 %v940_v51, %v837_v33  ;;  %v1786_v6 = vrot.slane %v3191_v44, %v1785_v27  ;;  %v2701_v27 = vld [vmem:[%s3274_s6 + $0x8] sm:$0xff]  }
 0x106   : > { %v3176_v53 = vpop.f32.mrf.mxu0  ;;  %v1271_v55 = vpop.f32.mrf.mxu1 }
 0x107   : > { %v1302_v28 = vadd.f32 %v1271_v55, %v1072_v13  ;;  %v1078_v46 = vadd.f32 %v3176_v53, %v958_v50 }
 0x108   : > { %v1057_v38 = vpop.f32.mrf.mxu0  ;;  %v2510_v57 = vpop.f32.mrf.mxu1 }
 0x109   : > { %v1305_v17 = vadd.f32 %v2510_v57, %v1075_v26  ;;  %v1076_v0 = vadd.f32 %v1057_v38, %v956_v29 }
 0x10a   : > { %v3178_v56 = vpop.f32.mrf.mxu0  ;;  %v1274_v62 = vpop.f32.mrf.mxu1 }
 0x10b   : > { %v1303_v58 = vadd.f32 %v1274_v62, %v1073_v39  ;;  %v1079_v62 = vadd.f32 %v3178_v56, %v959_v20 }
 0x10c   : > { %v3180_v60 = vpop.f32.mrf.mxu0  ;;  %v2513_v5 = vpop.f32.mrf.mxu1 }
 0x10d   : > { %v1077_v4 = vadd.f32 %v3180_v60, %v957_v52  ;;  %v1308_v38 = vadd.f32 %v2513_v5, %v1078_v46 }
 0x10e   : > { %v2519_v63 = vpop.f32.mrf.mxu0  ;;  %v1287_v10 = vpop.f32.mrf.mxu1 }
 0x10f   : > { %v1426_v55 = vadd.f32 %v2519_v63, %v1304_v34  ;;  %v1306_v63 = vadd.f32 %v1287_v10, %v1076_v0  ;;  %v2702_v0 = vld [vmem:[%s3274_s6] sm:$0xff]  }
 0x110   : > { %v1393_v3 = vpop.f32.mrf.mxu0  ;;  %v2514_v18 = vpop.f32.mrf.mxu1 }
 0x111   : > { %v1424_v47 = vadd.f32 %v1393_v3, %v1302_v28  ;;  %v1309_v8 = vadd.f32 %v2514_v18, %v1079_v62 }
 0x112   : > { %v2520_v7 = vpop.f32.mrf.mxu0  ;;  %v1290_v30 = vpop.f32.mrf.mxu1 }
 0x113   : > { %v1427_v35 = vadd.f32 %v2520_v7, %v1305_v17  ;;  %v1307_v12 = vadd.f32 %v1290_v30, %v1077_v4 }
 0x114   : > { %v1396_v11 = vpop.f32.mrf.mxu0  ;;  %v2529_v31 = vpop.f32.mrf.mxu1 }
 0x115   : > { %v1546_v57 = vadd.f32 %v2529_v31, %v1426_v55  ;;  %v1425_v1 = vadd.f32 %v1396_v11, %v1303_v58 }
 0x116   : > { %v2523_v23 = vpop.f32.mrf.mxu0  ;;  %v1513_v19 = vpop.f32.mrf.mxu1 }
 0x117   : > { %v1544_v54 = vadd.f32 %v1513_v19, %v1424_v47  ;;  %v1430_v22 = vadd.f32 %v2523_v23, %v1308_v38 }
 0x118   : > { %v1409_v36 = vpop.f32.mrf.mxu0  ;;  %v2530_v41 = vpop.f32.mrf.mxu1 }
 0x119   : > { %v1547_v45 = vadd.f32 %v2530_v41, %v1427_v35  ;;  %v1428_v53 = vadd.f32 %v1409_v36, %v1306_v63 }
 0x11a   : > { %v2524_v42 = vpop.f32.mrf.mxu0  ;;  %v1516_v14 = vpop.f32.mrf.mxu1 }
 0x11b   : > { %v1545_v2 = vadd.f32 %v1516_v14, %v1425_v1  ;;  %v1431_v25 = vadd.f32 %v2524_v42, %v1309_v8  ;;  %v1825_v1 = vsub.s32 1, %v3185_v49 }
 0x11c   : > { %v1412_v59 = vpop.f32.mrf.mxu0  ;;  %v2533_v3 = vpop.f32.mrf.mxu1 }
 0x11d   : > { %v1550_v28 = vadd.f32 %v2533_v3, %v1430_v22  ;;  %v1429_v37 = vadd.f32 %v1412_v59, %v1307_v12  ;;  %v1826_v14 = vrot.slane %v3191_v44, %v1825_v1 }
 0x11e   : > { %v2539_v61 = vpop.f32.mrf.mxu0  ;;  %v1529_v11 = vpop.f32.mrf.mxu1 }
 0x11f   : > { %v1776_v43 = vadd.f32 %v2539_v61, %v1546_v57  ;;  %v1548_v60 = vadd.f32 %v1529_v11, %v1428_v53  ;;  %v2700_v61 = vld [vmem:[%s3274_s6 + $0x10] sm:$0xff]  }
 0x120   : > { %v1743_v48 = vpop.f32.mrf.mxu0  ;;  %v2534_v10 = vpop.f32.mrf.mxu1  ;;  %2579 = vmatprep.subr.bf16.mxu0 %v2700_v61 }
 0x121   : > { %v1774_v51 = vadd.f32 %v1743_v48, %v1544_v54  ;;  %v1789_v24 = vadd.f32 %v1786_v6, %v1776_v43  ;;  %v1551_v17 = vadd.f32 %v2534_v10, %v1431_v25  ;;  %2580 = vmatpush3.bf16.msra.mxu0 %v2700_v61 }
 0x122   : > { %v2540_v7 = vpop.f32.mrf.mxu0  ;;  %v1532_v34 = vpop.f32.mrf.mxu1  ;;  %2581 = vmatprep.subr.bf16.mxu0 %v2701_v27 }
 0x123   : > { %v1777_v9 = vadd.f32 %v2540_v7, %v1547_v45  ;;  %v1787_v15 = vadd.f32 %v1786_v6, %v1774_v51  ;;  %v1797_v30 = vmax.f32 %v1789_v24, 0.0  ;;  %v1549_v40 = vadd.f32 %v1532_v34, %v1429_v37 }
 0x124   : > { %v1746_v13 = vpop.f32.mrf.mxu0 }
 0x125   : > { %v1790_v21 = vadd.f32 %v1786_v6, %v1777_v9  ;;  %v1775_v56 = vadd.f32 %v1746_v13, %v1545_v2  ;;  %v1795_v18 = vmax.f32 %v1787_v15, 0.0  ;;  %2582 = vmatpush3.bf16.msra.mxu0 %v2701_v27 }
 0x126   : > { %v2543_v32 = vpop.f32.mrf.mxu0  ;;  %2583 = vmatprep.subr.bf16.mxu0 %v2702_v0 }
 0x127   : > { %v1788_v26 = vadd.f32 %v1786_v6, %v1775_v56  ;;  %v1798_v5 = vmax.f32 %v1790_v21, 0.0  ;;  %v1780_v47 = vadd.f32 %v2543_v32, %v1550_v28 }
 0x128   : > { %v1759_v31 = vpop.f32.mrf.mxu0 }
 0x129   : > { %v1796_v39 = vmax.f32 %v1788_v26, 0.0  ;;  %v1778_v36 = vadd.f32 %v1759_v31, %v1548_v60  ;;  %v1804_v29 = vpack.c.bf16 %v1798_v5, %v1797_v30  ;;  %v1793_v55 = vadd.f32 %v1786_v6, %v1780_v47  ;;  %2584 = vmatpush3.bf16.msra.mxu0 %v2702_v0 }
 0x12a   : > { %v2544_v23 = vpop.f32.mrf.mxu0  ;;  %v1970_v5 = vsub.s32 2, %v3185_v49 }
 0x12b   : > { %v1803_v16 = vpack.c.bf16 %v1796_v39, %v1795_v18  ;;  %v1781_v58 = vadd.f32 %v2544_v23, %v1551_v17  ;;  %v1791_v19 = vadd.f32 %v1786_v6, %v1778_v36  ;;  %v1801_v41 = vmax.f32 %v1793_v55, 0.0 }
 0x12c   : > { %v1762_v42 = vpop.f32.mrf.mxu0  ;;  %v1971_v28 = vrot.slane %v3191_v44, %v1970_v5 }
 0x12d   : > { %2561 = vmatprep.mubr.bf16.mxu1 %v1803_v16  ;;  %v1794_v33 = vadd.f32 %v1786_v6, %v1781_v58  ;;  %v1779_v50 = vadd.f32 %v1762_v42, %v1549_v40  ;;  %v1799_v35 = vmax.f32 %v1791_v19, 0.0 }
 0x12e   : > { %2562 = vmatmul.mubr.bf16.vlgmr.msra.gmra.mxu1 %v1804_v29 }
 0x12f   : > { %v1792_v59 = vadd.f32 %v1786_v6, %v1779_v50  ;;  %v1802_v20 = vmax.f32 %v1794_v33, 0.0 }
 0x131   : > { %v1800_v54 = vmax.f32 %v1792_v59, 0.0  ;;  %v1806_v57 = vpack.c.bf16 %v1802_v20, %v1801_v41 }
 0x133   : > { %v1805_v52 = vpack.c.bf16 %v1800_v54, %v1799_v35 }
 0x135   : > { %2565 = vmatprep.mubr.bf16.mxu1 %v1805_v52 }
 0x136   : > { %2566 = vmatmul.mubr.bf16.gmra.mxu1 %v1806_v57 }
 0x1ee   : > { %v2563_v45 = vpop.f32.mrf.mxu1 }
 0x1ef   : > { %v1918_v51 = vadd.f32 %v2563_v45, %v1826_v14 }
 0x1f0   : > { %v1909_v46 = vpop.f32.mrf.mxu1 }
 0x1f1   : > { %v1910_v62 = vadd.f32 %v1909_v46, %v1826_v14  ;;  %v1942_v6 = vmax.f32 %v1918_v51, 0.0 }
 0x1f2   : > { %v2564_v48 = vpop.f32.mrf.mxu1 }
 0x1f3   : > { %v1921_v63 = vadd.f32 %v2564_v48, %v1826_v14  ;;  %v1940_v38 = vmax.f32 %v1910_v62, 0.0 }
 0x1f4   : > { %v1912_v2 = vpop.f32.mrf.mxu1 }
 0x1f5   : > { %v1913_v3 = vadd.f32 %v1912_v2, %v1826_v14  ;;  %v1943_v4 = vmax.f32 %v1921_v63, 0.0 }
 0x1f6   : > { %v2567_v7 = vpop.f32.mrf.mxu1 }
 0x1f7   : > { %v1941_v43 = vmax.f32 %v1913_v3, 0.0  ;;  %v1949_v9 = vpack.c.bf16 %v1943_v4, %v1942_v6  ;;  %v1934_v15 = vadd.f32 %v2567_v7, %v1826_v14 }
 0x1f8   : > { %v1925_v11 = vpop.f32.mrf.mxu1 }
 0x1f9   : > { %v1948_v8 = vpack.c.bf16 %v1941_v43, %v1940_v38  ;;  %v1926_v13 = vadd.f32 %v1925_v11, %v1826_v14  ;;  %v1946_v25 = vmax.f32 %v1934_v15, 0.0 }
 0x1fa   : > { %v2568_v12 = vpop.f32.mrf.mxu1 }
 0x1fb   : > { %2585 = vmatprep.mubr.bf16.mxu0 %v1948_v8  ;;  %v1937_v53 = vadd.f32 %v2568_v12, %v1826_v14  ;;  %v1944_v22 = vmax.f32 %v1926_v13, 0.0 }
 0x1fc   : > { %2586 = vmatmul.mubr.bf16.vlgmr.msra.gmra.mxu0 %v1949_v9  ;;  %v1928_v21 = vpop.f32.mrf.mxu1 }
 0x1fd   : > { %v1929_v56 = vadd.f32 %v1928_v21, %v1826_v14  ;;  %v1947_v10 = vmax.f32 %v1937_v53, 0.0 }
 0x1ff   : > { %v1945_v24 = vmax.f32 %v1929_v56, 0.0  ;;  %v1951_v60 = vpack.c.bf16 %v1947_v10, %v1946_v25 }
 0x201   : > { %v1950_v26 = vpack.c.bf16 %v1945_v24, %v1944_v22 }
 0x203   : > { %2589 = vmatprep.mubr.bf16.mxu0 %v1950_v26 }
 0x204   : > { %2590 = vmatmul.mubr.bf16.gmra.mxu0 %v1951_v60 }
 0x2bc   : > { %v2587_v32 = vpop.f32.mrf.mxu0 }
 0x2bd   : > { %v2063_v34 = vadd.f32 %v2587_v32, %v1971_v28 }
 0x2be   : > { %v2054_v37 = vpop.f32.mrf.mxu0 }
 0x2bf   : > { %v2087_v18 = vmax.f32 %v2063_v34, 0.0  ;;  %v2055_v39 = vadd.f32 %v2054_v37, %v1971_v28 }
 0x2c0   : > { %v2588_v17 = vpop.f32.mrf.mxu0 }
 0x2c1   : > { %2095 = vst [vmem:[%s357_s14 + $0x10] sm:$0xff] %v2087_v18  ;;  %v2085_v30 = vmax.f32 %v2055_v39, 0.0  ;;  %v2066_v31 = vadd.f32 %v2588_v17, %v1971_v28 }
 0x2c2   : > { %v2057_v36 = vpop.f32.mrf.mxu0 }
 0x2c3   : > { %2093 = vst [vmem:[%s357_s14] sm:$0xff] %v2085_v30  ;;  %v2088_v40 = vmax.f32 %v2066_v31, 0.0  ;;  %v2058_v49 = vadd.f32 %v2057_v36, %v1971_v28 }
 0x2c4   : > { %v2591_v44 = vpop.f32.mrf.mxu0 }
 0x2c5   : > { %2096 = vst [vmem:[%s357_s14 + $0x18] sm:$0xff] %v2088_v40  ;;  %v2086_v16 = vmax.f32 %v2058_v49, 0.0  ;;  %v2079_v29 = vadd.f32 %v2591_v44, %v1971_v28 }
 0x2c6   : > { %v2070_v47 = vpop.f32.mrf.mxu0 }
 0x2c7   : > { %2094 = vst [vmem:[%s357_s14 + $0x8] sm:$0xff] %v2086_v16  ;;  %v2091_v23 = vmax.f32 %v2079_v29, 0.0  ;;  %v2071_v58 = vadd.f32 %v2070_v47, %v1971_v28 }
 0x2c8   : > { %v2592_v42 = vpop.f32.mrf.mxu0 }
 0x2c9   : > { %2099 = vst [vmem:[%s357_s14 + $0x30] sm:$0xff] %v2091_v23  ;;  %v2089_v19 = vmax.f32 %v2071_v58, 0.0  ;;  %v2082_v33 = vadd.f32 %v2592_v42, %v1971_v28 }
 0x2ca   : > { %v2073_v50 = vpop.f32.mrf.mxu0 }
 0x2cb   : > { %2097 = vst [vmem:[%s357_s14 + $0x20] sm:$0xff] %v2089_v19  ;;  %v2092_v55 = vmax.f32 %v2082_v33, 0.0  ;;  %v2074_v59 = vadd.f32 %v2073_v50, %v1971_v28 }
 0x2cd   : > { %2100 = vst [vmem:[%s357_s14 + $0x38] sm:$0xff] %v2092_v55  ;;  %v2090_v20 = vmax.f32 %v2074_v59, 0.0 }
 0x2cf   : > { %2098 = vst [vmem:[%s357_s14 + $0x28] sm:$0xff] %v2090_v20 }
 0x2d0   : > { %2716 = shalt.err (!%p2713_p5)
}
 0x2d1   : > { %s2717_s26 = scalar_lea.hbm %s3217_s22, 1024  ;;  %s2721_s24 = scalar_lea.hbm %s3276_s8, 2048 }
 0x2d2   : > { %p2718_p6 = scmp.ne.s32.totalorder %s3217_s22, %s2717_s26  ;;  %p2722_p10 = scmp.lt.s32.totalorder %s3217_s22, %s3276_s8 }
 0x2d3   : > { %p2723_p11 = scmp.lt.s32.totalorder %s2721_s24, %s2717_s26 }
 0x2d4   : > { %p2719_p7 = pnand %p2718_p6, %p2869_p4 }
 0x2d5   : > { %p2724_p12 = por %p2723_p11, %p2722_p10 }
 0x2d6   : > { %p2720_p9 = pneg %p2719_p7 }
 0x2d8   : > { %p2725_p13 = pnand %p2724_p12, %p2720_p9 }
 0x2da   : > { %2728 = shalt.err (!%p2725_p13)
}
 0x2db   : > { %s2782_s23 = smov 128   ;;  %s2783_s25 = smov 8  }
 0x2dc   : > { %2606 = dma.vmem_to_hbm [thread:$0]  (%p2869_p4), %s3219_s19, 1024, %s3217_s22, %s3223_s30, %s2782_s23, %s2782_s23, %s2783_s25  }
 0x2dd PF: > { %p2612_p0 = scmp.ge.s32.totalorder %s2779_s10, 2  ;;  %s2132_s11 = sand.u32 1, %s2759_s27  }
 0x2de   : > { %s2133_s12 = scalar_lea.sflag [#allocation3], %s2132_s11 }
 0x2df   : > { %p2609_p1 = pnand %p2612_p0, %p2876_p8 }
 0x2e1   : > { %p2610_p2 = pneg %p2609_p1 }
 0x2e3   : > { %2754 = dma.done.wait (%p2610_p2), %s2133_s12, 1024  }
 0x2e4   : > { %2756 = vsyncadd (%p2610_p2), %s2133_s12, 4294966272  ;;  %s21_s10 = sadd.s32 1, %s2779_s10   ;;  %s3281_s27 = smov %s2763_s28 }
 0x2e5   : > { %p18_p3 = scmp.ge.s32.totalorder %s21_s10, 4   ;;  %s3282_s28 = smov %s2767_s29 }
 0x2e6   : > { %s3283_s29 = smov %s2882_s18  ;;  %s3284_s30 = smov %s2775_s9 }
 0x2e7   : > { %s3285_s9 = smov %s3287_s13  ;;  %20 = sbr.rel (!%p18_p3) target bundleno = 4 (0x4), region = 110 }
 0x2ec   :  { %2138 = vsyncpa [#allocation3], 1 }
 0x2ed   :  { %2140 = vsyncpa [#allocation3 + $0x1], 1 }

// kernel: tpu_custom_call.1
= control target key start
LH: loop header
LB: loop body
LE: loop exit
PB: predicated region body
PF: predicated region fallthrough
CT: control target
= control target key end

     0   :  { %13 = vsyncpa [#allocation3], 0  ;;  %s3268_s0 = inlined_call_operand.vmem [shape: bf16[2,9,9,8], index: 0, kind: input, shape index: {}]   ;;  %s3269_s1 = inlined_call_operand.vmem [shape: bf16[2,9,9,8], index: 1, kind: input, shape index: {}]   ;;  %s3270_s2 = inlined_call_operand.vmem [shape: bf16[2,9,9,8], index: 2, kind: input, shape index: {}]   ;;  %s3271_s3 = inlined_call_operand.vmem [shape: bf16[2,9,9,8], index: 3, kind: input, shape index: {}]   ;;  %s3272_s4 = inlined_call_operand.vmem [shape: bf16[9,8,128], index: 4, kind: input, shape index: {}]   ;;  %s3273_s5 = inlined_call_operand.vmem [shape: bf16[128,128], index: 5, kind: input, shape index: {}]   ;;  %s3274_s6 = inlined_call_operand.vmem [shape: bf16[128,128], index: 6, kind: input, shape index: {}]   ;;  %s3275_s7 = inlined_call_operand.vmem [shape: f32[3,128], index: 7, kind: input, shape index: {}]   ;;  %s3276_s8 = inlined_call_operand.hbm [shape: f32[2,8,8,128], index: 8, kind: output, shape index: {}]  }
   0x1   :  { %15 = vsyncpa [#allocation3 + $0x1], 0  ;;  %s2829_s27 = smov 0   ;;  %s2831_s28 = smov 0  }
   0x2   :  { %s2833_s29 = smov 0   ;;  %s2835_s30 = smov 0  }
   0x3   :  { %s2837_s9 = smov 0   ;;  %s2839_s10 = smov 0  }
   0x4 LB: > { %s2242_s11 = sadd.s32 4294967295, %s2779_s10   ;;  %s2243_s12 = sadd.s32 4294967294, %s2779_s10   ;;  %s2779_s10 = sphi %s2839_s10, %s21_s10   ;;  %s2775_s9 = sphi %s2837_s9, %s3285_s9   ;;  %s2771_s30 = sphi %s2835_s30, %s3284_s30   ;;  %s2767_s29 = sphi %s2833_s29, %s3283_s29   ;;  %s2763_s28 = sphi %s2831_s28, %s3282_s28   ;;  %s2759_s27 = sphi %s2829_s27, %s3281_s27  }
   0x5   : > { %s33_s13 = sadd.s32 1, %s2775_s9  ;;  %s230_s14 = sadd.s32 1, %s2767_s29 }
   0x6   : > { %p35_p0 = scmp.ge.s32.totalorder %s33_s13, 2  ;;  %p240_p1 = scmp.ne.s32.totalorder %s2767_s29, %s2763_s28 }
   0x7   : > { %p241_p2 = scmp.eq.s32.totalorder %s2242_s11, 1  ;;  %p246_p3 = scmp.ne.s32.totalorder %s2763_s28, %s2759_s27 }
   0x8   : > { %s3287_s13 = smov (%p35_p0, %s33_s13), 0  ;;  %p247_p5 = scmp.eq.s32.totalorder %s2243_s12, 1 }
   0x9   : > { %p2869_p4 = por %p241_p2, %p240_p1  ;;  %s225_s16 = ssub.s32 %s2775_s9, %s3287_s13 }
   0xa   : > { %p2246_p6 = scmp.ge.s32.totalorder %s2779_s10, 1  ;;  %p228_p7 = scmp.eq.s32.totalorder %s225_s16, 0 }
   0xb   : > { %p2876_p8 = por %p247_p5, %p246_p3  ;;  %p309_p9 = scmp.lt.s32.totalorder %s2779_s10, 3 }
   0xc   : > { %s2882_s18 = scalar_select %p228_p7, %s2767_s29, %s230_s14  }
   0xd   : > { %p310_p10 = pnand %p2246_p6, %p309_p9 }
   0xe   : > { %p358_p11 = scmp.lt.s32.totalorder (!%p310_p10), %s2771_s30, 1 }
   0xf   : > { %313 = sbr.rel (%p310_p10) target bundleno = 733 (0x2dd), region = 52 }
  0x14   : > { %v2252_v0 = vld [vmem:[%s3272_s4 + $0x4] sm:$0xf]  ;;  %vm438_vm0 = vcmask 1043456   ;;  %v392_v2 = vld [vmem:[%s3272_s4] sm:$0xf]  ;;  %s359_s25 = scalar_select %p358_p11, %s2771_s30, 1 }
  0x15   : > { %2596 = vmatprep.subr.msk.bf16.mxu1 %vm438_vm0, %v2252_v0  ;;  %2595 = vmatprep.subr.msk.bf16.mxu0 %vm438_vm0, %v2252_v0  ;;  %v440_v1 = vsel %vm438_vm0, %v2252_v0, 0  ;;  %v2269_v3 = vld [vmem:[%s3272_s4 + $0x8] sm:$0xf]  ;;  %vm425_vm1 = vcmask 64512   ;;  %v540_v4 = vsel %vm438_vm0, %v392_v2, 0 }
  0x16   : > { %2594 = vmatpush3.bf16.msra.mxu1 %v440_v1  ;;  %2456 = vmatpush3.bf16.msra.mxu0 %v440_v1  ;;  %s2900_s26 = smul.u32 72, %s359_s25  ;;  %v765_v5 = vsel %vm438_vm0, %v2269_v3, 0  ;;  %v2278_v7 = vld [vmem:[%s3272_s4 + $0xc] sm:$0xf]  ;;  %v2287_v8 = vld [vmem:[%s3272_s4 + $0x10] sm:$0xf] }
  0x17   : > { %2597 = vmatprep.subr.msk.bf16.mxu1 %vm438_vm0, %v392_v2  ;;  %2598 = vmatprep.subr.msk.bf16.mxu0 %vm438_vm0, %v2269_v3  ;;  %vm623_vm2 = vsmask.f32 3328  ;;  %vm624_vm3 = vsmask.f32 7440  ;;  %v885_v13 = vsel %vm438_vm0, %v2278_v7, 0  ;;  %v2933_v14 = vsel %vm438_vm0, %v2287_v8, 0 }
  0x18   : > { %s2906_s14 = scalar_lea.vmem %s3269_s1, %s2900_s26  ;;  %s2924_s24 = scalar_lea.vmem %s3268_s0, %s2900_s26  ;;  %v2950_v38 = vld [vmem:[%s3272_s4 + $0x14] sm:$0xf]  ;;  %vm2954_vm4 = vmor %vm623_vm2, %vm624_vm3  ;;  %v2689_v43 = vld [vmem:[%s3273_s5 + $0x28] sm:$0xff]  }
  0x19   : > { %v2663_v6 = vld [vmem:[%s2906_s14] ss:$8 sps:$4 sm:$0xff]   ;;  %v2665_v10 = vld [vmem:[%s2906_s14 + $0x10] ss:$8 sps:$4 sm:$0xff]   ;;  %v608_v16 = vld [vmem:[%s2924_s24 + $0x4] sm:$0x1]  ;;  %s2987_s21 = scalar_lea.vmem %s3270_s2, %s2900_s26  ;;  %s3003_s25 = scalar_lea.vmem %s3271_s3, %s2900_s26 }
  0x1a   : > { %v2664_v9 = vld [vmem:[%s2906_s14 + $0x20] ss:$8 sps:$4 sm:$0xff]   ;;  %2457 = vmatprep.mubr.msk.bf16.mxu0 %vm425_vm1, %v2663_v6  ;;  %v2666_v11 = vld [vmem:[%s2906_s14 + $0x30] ss:$8 sps:$4 sm:$0xff]   ;;  %v610_v19 = vld [vmem:[%s2924_s24 + $0xc] sm:$0x1] }
  0x1b   : > { %2461 = vmatprep.mubr.msk.bf16.mxu1 %vm425_vm1, %v2664_v9  ;;  %2458 = vmatmul.mubr.msk.bf16.vlgmr.msra.gmra.mxu0 %vm425_vm1, %v2665_v10  ;;  %v2667_v12 = vld [vmem:[%s2924_s24] ss:$8 sps:$4 sm:$0xff]   ;;  %v2668_v18 = vld [vmem:[%s2924_s24 + $0x10] ss:$8 sps:$4 sm:$0xff]   ;;  %v636_v22 = vshll.u32 %v608_v16, 16  ;;  %v650_v25 = vshll.u32 %v610_v19, 16 }
  0x1c   : > { %2462 = vmatmul.mubr.msk.bf16.vlgmr.msra.gmra.mxu1 %vm425_vm1, %v2666_v11  ;;  %2476 = vmatpush3.bf16.msra.mxu0 %v765_v5  ;;  %v607_v15 = vld [vmem:[%s2924_s24] sm:$0xf]  ;;  %v609_v17 = vld [vmem:[%s2924_s24 + $0x8] sm:$0xf]  ;;  %v611_v26 = vld [vmem:[%s2924_s24 + $0x10] sm:$0xf] }
  0x1d   : > { %2466 = vmatpush3.bf16.msra.mxu1 %v540_v4  ;;  %2467 = vmatprep.mubr.msk.bf16.mxu1 %vm425_vm1, %v2667_v12  ;;  %v627_v20 = vshrl.u32 %v607_v15, 16  ;;  %v630_v21 = vshll.u32 %v607_v15, 16  ;;  %v641_v23 = vshrl.u32 %v609_v17, 16  ;;  %v644_v24 = vshll.u32 %v609_v17, 16  ;;  %v612_v27 = vld [vmem:[%s2924_s24 + $0x14] sm:$0x1] }
  0x1e   : > { %2599 = vmatprep.subr.msk.bf16.mxu1 %vm438_vm0, %v2278_v7  ;;  %2600 = vmatprep.subr.msk.bf16.mxu0 %vm438_vm0, %v2287_v8  ;;  %v638_v30 = vrot.slane %v636_v22, 5  ;;  %v613_v32 = vld [vmem:[%s2924_s24 + $0x18] sm:$0xf]  ;;  %v652_v34 = vrot.slane %v650_v25, 5  ;;  %v614_v35 = vld [vmem:[%s2924_s24 + $0x1c] sm:$0x1] }
  0x1f   : > { %v629_v28 = vrot.slane %v627_v20, 4  ;;  %v632_v29 = vrot.slane %v630_v21, 5  ;;  %v643_v31 = vrot.slane %v641_v23, 4  ;;  %v646_v33 = vrot.slane %v644_v24, 5  ;;  %v2669_v52 = vld [vmem:[%s2924_s24 + $0x20] ss:$8 sps:$4 sm:$0xff]  }
  0x20   : > { %v655_v36 = vshrl.u32 %v611_v26, 16  ;;  %v658_v37 = vshll.u32 %v611_v26, 16  ;;  %v664_v40 = vshll.u32 %v612_v27, 16  ;;  %v669_v41 = vshrl.u32 %v613_v32, 16  ;;  %v2670_v58 = vld [vmem:[%s2924_s24 + $0x30] ss:$8 sps:$4 sm:$0xff]  }
  0x21   : > { %v633_v39 = vor.u32 %v632_v29, %v629_v28  ;;  %v672_v42 = vshll.u32 %v613_v32, 16  ;;  %v647_v44 = vor.u32 %v646_v33, %v643_v31  ;;  %v678_v47 = vshll.u32 %v614_v35, 16  ;;  %v615_v59 = vld [vmem:[%s2924_s24 + $0x20] sm:$0xf]  ;;  %v616_v60 = vld [vmem:[%s2924_s24 + $0x24] sm:$0x1] }
  0x22   : > { %v657_v45 = vrot.slane %v655_v36, 4  ;;  %v660_v46 = vrot.slane %v658_v37, 5  ;;  %v666_v49 = vrot.slane %v664_v40, 5  ;;  %v671_v50 = vrot.slane %v669_v41, 4  ;;  %v617_v63 = vld [vmem:[%s2924_s24 + $0x28] sm:$0xf] }
  0x23   : > { %v634_v48 = vrot.slane %v633_v39, 4  ;;  %v674_v51 = vrot.slane %v672_v42, 5  ;;  %v648_v53 = vrot.slane %v647_v44, 4  ;;  %v680_v55 = vrot.slane %v678_v47, 5  ;;  %v618_v0 = vld [vmem:[%s2924_s24 + $0x2c] sm:$0x1] }
  0x24   : > { %2468 = vmatmul.mubr.msk.bf16.vlgmr.msra.gmra.mxu1 %vm425_vm1, %v2668_v18  ;;  %v661_v54 = vor.u32 %v660_v46, %v657_v45  ;;  %v683_v1 = vshrl.u32 %v615_v59, 16  ;;  %v686_v4 = vshll.u32 %v615_v59, 16  ;;  %v692_v5 = vshll.u32 %v616_v60, 16  ;;  %v619_v6 = vld [vmem:[%s2924_s24 + $0x30] sm:$0xf]  ;;  %s355_s26 = sand.u32 1, %s2763_s28  }
  0x25   : > { %2486 = vmatpush3.bf16.msra.mxu1 %v885_v13  ;;  %v639_v56 = vsel %vm2954_vm4, %v634_v48, %v638_v30  ;;  %v675_v57 = vor.u32 %v674_v51, %v671_v50  ;;  %2471 = vmatprep.mubr.msk.bf16.mxu1 %vm425_vm1, %v2669_v52  ;;  %v653_v61 = vsel %vm2954_vm4, %v648_v53, %v652_v34  ;;  %v697_v9 = vshrl.u32 %v617_v63, 16  ;;  %v620_v11 = vld [vmem:[%s2924_s24 + $0x34] sm:$0x1]  ;;  %v621_v17 = vld [vmem:[%s2924_s24 + $0x38] sm:$0xf]  ;;  %s2247_s16 = sshll.u32 %s355_s26, 6 }
  0x26   : > { %2601 = vmatprep.subr.msk.bf16.mxu1 %vm438_vm0, %v2950_v38  ;;  %v662_v62 = vrot.slane %v661_v54, 4  ;;  %v2270_v2 = vcombine.low %v639_v56, %v653_v61  ;;  %v685_v8 = vrot.slane %v683_v1, 4  ;;  %v700_v10 = vshll.u32 %v617_v63, 16  ;;  %v2313_v18 = vld [vmem:[%s3272_s4 + $0x18] sm:$0xf] }
  0x27   : > { %v676_v3 = vrot.slane %v675_v57, 4  ;;  %v688_v13 = vrot.slane %v686_v4, 5  ;;  %v694_v15 = vrot.slane %v692_v5, 5  ;;  %v706_v16 = vshll.u32 %v618_v0, 16  ;;  %v622_v22 = vld [vmem:[%s2924_s24 + $0x3c] sm:$0x1] }
  0x28   : > { %v667_v7 = vsel %vm2954_vm4, %v662_v62, %v666_v49  ;;  %2477 = vmatprep.mubr.msk.bf16.mxu0 %vm425_vm1, %v2270_v2  ;;  %v699_v20 = vrot.slane %v697_v9, 4  ;;  %v702_v21 = vrot.slane %v700_v10, 5  ;;  %v711_v23 = vshrl.u32 %v619_v6, 16  ;;  %v2671_v35 = vld [vmem:[%s2987_s21] ss:$8 sps:$4 sm:$0xff]  }
  0x29   : > { %v681_v12 = vsel %vm2954_vm4, %v676_v3, %v680_v55  ;;  %v689_v24 = vor.u32 %v688_v13, %v685_v8  ;;  %v708_v25 = vrot.slane %v706_v16, 5  ;;  %v714_v26 = vshll.u32 %v619_v6, 16  ;;  %v2672_v44 = vld [vmem:[%s2987_s21 + $0x10] ss:$8 sps:$4 sm:$0xff]   ;;  %v2330_v51 = vld [vmem:[%s3272_s4 + $0x1c] sm:$0xf] }
  0x2a   : > { %v2271_v19 = vcombine.low %v667_v7, %v681_v12  ;;  %v720_v27 = vshll.u32 %v620_v11, 16  ;;  %v703_v28 = vor.u32 %v702_v21, %v699_v20  ;;  %v713_v29 = vrot.slane %v711_v23, 4  ;;  %v2675_v53 = vld [vmem:[%s2987_s21 + $0x20] ss:$8 sps:$4 sm:$0xff]   ;;  %v2676_v57 = vld [vmem:[%s2987_s21 + $0x30] ss:$8 sps:$4 sm:$0xff]  }
  0x2b   : > { %v725_v30 = vshrl.u32 %v621_v17, 16  ;;  %v728_v31 = vshll.u32 %v621_v17, 16  ;;  %v690_v32 = vrot.slane %v689_v24, 4  ;;  %v716_v33 = vrot.slane %v714_v26, 5  ;;  %v1081_v59 = vld [vmem:[%s2987_s21 + $0x4] sm:$0x1] }
  0x2c   : > { %2472 = vmatmul.mubr.msk.bf16.gmra.mxu1 %vm425_vm1, %v2670_v58  ;;  %2478 = vmatmul.mubr.msk.bf16.vlgmr.msra.gmra.mxu0 %vm425_vm1, %v2271_v19  ;;  %v734_v34 = vshll.u32 %v622_v22, 16  ;;  %v704_v36 = vrot.slane %v703_v28, 4  ;;  %v722_v42 = vrot.slane %v720_v27, 5  ;;  %v1235_v49 = vsel %vm438_vm0, %v2950_v38, 0  ;;  %v2673_v38 = vld [vmem:[%s3003_s25] ss:$8 sps:$4 sm:$0xff]  }
  0x2d   : > { %2496 = vmatpush3.bf16.msra.mxu0 %v2933_v14  ;;  %v727_v37 = vrot.slane %v725_v30, 4  ;;  %v730_v39 = vrot.slane %v728_v31, 5  ;;  %v695_v40 = vsel %vm2954_vm4, %v690_v32, %v694_v15  ;;  %v717_v41 = vor.u32 %v716_v33, %v713_v29  ;;  %2487 = vmatprep.mubr.msk.bf16.mxu1 %vm425_vm1, %v2671_v35  ;;  %v1080_v58 = vld [vmem:[%s2987_s21] sm:$0xf]  ;;  %v1082_v60 = vld [vmem:[%s2987_s21 + $0x8] sm:$0xf] }
  0x2e   : > { %2602 = vmatprep.subr.msk.bf16.mxu0 %vm438_vm0, %v2313_v18  ;;  %v709_v14 = vsel %vm2954_vm4, %v704_v36, %v708_v25  ;;  %v736_v46 = vrot.slane %v734_v34, 5  ;;  %v1357_v56 = vsel %vm438_vm0, %v2313_v18, 0  ;;  %v1083_v61 = vld [vmem:[%s2987_s21 + $0xc] sm:$0x1]  ;;  %v1097_v62 = vshrl.u32 %v1080_v58, 16 }
  0x2f   : > { %v731_v45 = vor.u32 %v730_v39, %v727_v37  ;;  %v2272_v47 = vcombine.low %v695_v40, %v709_v14  ;;  %v718_v48 = vrot.slane %v717_v41, 4  ;;  %v1100_v63 = vshll.u32 %v1080_v58, 16  ;;  %v1084_v2 = vld [vmem:[%s2987_s21 + $0x10] sm:$0xf]  ;;  %v1085_v6 = vld [vmem:[%s2987_s21 + $0x14] sm:$0x1] }
  0x30   : > { %v1106_v0 = vshll.u32 %v1081_v59, 16  ;;  %v1111_v1 = vshrl.u32 %v1082_v60, 16  ;;  %v2674_v3 = vld [vmem:[%s3003_s25 + $0x10] ss:$8 sps:$4 sm:$0xff]   ;;  %v1114_v4 = vshll.u32 %v1082_v60, 16  ;;  %v1120_v5 = vshll.u32 %v1083_v61, 16 }
  0x31   : > { %v732_v50 = vrot.slane %v731_v45, 4  ;;  %2481 = vmatprep.mubr.msk.bf16.mxu0 %vm425_vm1, %v2272_v47  ;;  %v723_v52 = vsel %vm2954_vm4, %v718_v48, %v722_v42  ;;  %v1086_v7 = vld [vmem:[%s2987_s21 + $0x18] sm:$0xf]  ;;  %v2677_v8 = vld [vmem:[%s3003_s25 + $0x20] ss:$8 sps:$4 sm:$0xff]   ;;  %v1099_v9 = vrot.slane %v1097_v62, 4 }
  0x32   : > { %v1102_v10 = vrot.slane %v1100_v63, 5  ;;  %v1108_v11 = vrot.slane %v1106_v0, 5  ;;  %v1113_v12 = vrot.slane %v1111_v1, 4  ;;  %v1087_v13 = vld [vmem:[%s2987_s21 + $0x1c] sm:$0x1]  ;;  %v1116_v15 = vrot.slane %v1114_v4, 5 }
  0x33   : > { %v737_v54 = vsel %vm2954_vm4, %v732_v50, %v736_v46  ;;  %v1122_v16 = vrot.slane %v1120_v5, 5  ;;  %v1125_v17 = vshrl.u32 %v1084_v2, 16  ;;  %v1128_v18 = vshll.u32 %v1084_v2, 16  ;;  %v3040_v27 = vld [vmem:[%s3272_s4 + $0x20] sm:$0xf] }
  0x34   : > { %2488 = vmatmul.mubr.msk.bf16.vlgmr.msra.gmra.mxu1 %vm425_vm1, %v2672_v44  ;;  %v2273_v55 = vcombine.low %v723_v52, %v737_v54  ;;  %v1103_v19 = vor.u32 %v1102_v10, %v1099_v9  ;;  %v1134_v20 = vshll.u32 %v1085_v6, 16  ;;  %v1139_v21 = vshrl.u32 %v1086_v7, 16  ;;  %v1088_v39 = vld [vmem:[%s2987_s21 + $0x20] sm:$0xf]  ;;  %v1089_v40 = vld [vmem:[%s2987_s21 + $0x24] sm:$0x1] }
  0x35   : > { %2506 = vmatpush3.bf16.msra.mxu1 %v1235_v49  ;;  %2491 = vmatprep.mubr.msk.bf16.mxu1 %vm425_vm1, %v2675_v53  ;;  %v1142_v22 = vshll.u32 %v1086_v7, 16  ;;  %v1117_v23 = vor.u32 %v1116_v15, %v1113_v12  ;;  %v1127_v24 = vrot.slane %v1125_v17, 4  ;;  %v1130_v25 = vrot.slane %v1128_v18, 5  ;;  %v1090_v41 = vld [vmem:[%s2987_s21 + $0x28] sm:$0xf] }
  0x36   : > { %2603 = vmatprep.subr.msk.bf16.mxu1 %vm438_vm0, %v2330_v51  ;;  %2482 = vmatmul.mubr.msk.bf16.gmra.mxu0 %vm425_vm1, %v2273_v55  ;;  %v1148_v26 = vshll.u32 %v1087_v13, 16  ;;  %v1104_v28 = vrot.slane %v1103_v19, 4  ;;  %v1141_v29 = vrot.slane %v1139_v21, 4  ;;  %v1477_v31 = vsel %vm438_vm0, %v2330_v51, 0  ;;  %v2678_v42 = vld [vmem:[%s3003_s25 + $0x30] ss:$8 sps:$4 sm:$0xff]  }
  0x37   : > { %2497 = vmatprep.mubr.msk.bf16.mxu0 %vm425_vm1, %v2673_v38  ;;  %v1144_v30 = vrot.slane %v1142_v22, 5  ;;  %v1118_v32 = vrot.slane %v1117_v23, 4  ;;  %v1131_v33 = vor.u32 %v1130_v25, %v1127_v24  ;;  %v1136_v34 = vrot.slane %v1134_v20, 5  ;;  %v1091_v45 = vld [vmem:[%s2987_s21 + $0x2c] sm:$0x1]  ;;  %s2781_s25 = smov [#allocation2]  }
  0x38   : > { %v1150_v35 = vrot.slane %v1148_v26, 5  ;;  %v1109_v36 = vsel %vm2954_vm4, %v1104_v28, %v1108_v11  ;;  %v1153_v46 = vshrl.u32 %v1088_v39, 16  ;;  %v1156_v47 = vshll.u32 %v1088_v39, 16  ;;  %v2679_v50 = vld [vmem:[%s2924_s24 + $0x8] ss:$8 sps:$4 sm:$0xff]   ;;  %s2707_s11 = sshll.u32 %s2781_s25, 4  ;;  %s2708_s11 = int_to_ptr.vmem [resolvable:$false] %s2707_s11 }
  0x39   : > { %v1145_v37 = vor.u32 %v1144_v30, %v1141_v29  ;;  %v1123_v44 = vsel %vm2954_vm4, %v1118_v32, %v1122_v16  ;;  %v1132_v14 = vrot.slane %v1131_v33, 4  ;;  %v1162_v51 = vshll.u32 %v1089_v40, 16  ;;  %v1092_v53 = vld [vmem:[%s2987_s21 + $0x30] sm:$0xf]  ;;  %v1094_v62 = vld [vmem:[%s2987_s21 + $0x38] sm:$0xf] }
  0x3a   : > { %v2297_v48 = vcombine.low %v1109_v36, %v1123_v44  ;;  %v1167_v52 = vshrl.u32 %v1090_v41, 16  ;;  %v1155_v38 = vrot.slane %v1153_v46, 4  ;;  %v1158_v55 = vrot.slane %v1156_v47, 5  ;;  %v1095_v2 = vld [vmem:[%s2987_s21 + $0x3c] sm:$0x1]  ;;  %s2709_s12 = scalar_lea.vmem %s2708_s11, 2048 }
  0x3b   : > { %v1146_v49 = vrot.slane %v1145_v37, 4  ;;  %v1137_v54 = vsel %vm2954_vm4, %v1132_v14, %v1136_v34  ;;  %v1164_v59 = vrot.slane %v1162_v51, 5  ;;  %v1176_v61 = vshll.u32 %v1091_v45, 16  ;;  %v2680_v16 = vld [vmem:[%s2924_s24 + $0x18] ss:$8 sps:$4 sm:$0xff]  }
  0x3c   : > { %2492 = vmatmul.mubr.msk.bf16.gmra.mxu1 %vm425_vm1, %v2676_v57  ;;  %v1093_v57 = vld [vmem:[%s2987_s21 + $0x34] sm:$0x1]  ;;  %v1169_v60 = vrot.slane %v1167_v52, 4  ;;  %v1159_v0 = vor.u32 %v1158_v55, %v1155_v38  ;;  %v1184_v5 = vshll.u32 %v1092_v53, 16  ;;  %v1195_v7 = vshrl.u32 %v1094_v62, 16 }
  0x3d   : > { %2507 = vmatprep.mubr.msk.bf16.mxu1 %vm425_vm1, %v2297_v48  ;;  %v1151_v58 = vsel %vm2954_vm4, %v1146_v49, %v1150_v35  ;;  %v1178_v4 = vrot.slane %v1176_v61, 5  ;;  %v1190_v6 = vshll.u32 %v1093_v57, 16  ;;  %v1198_v11 = vshll.u32 %v1094_v62, 16  ;;  %v2681_v29 = vld [vmem:[%s2924_s24 + $0x28] ss:$8 sps:$4 sm:$0xff]  }
  0x3e   : > { %2498 = vmatmul.mubr.msk.bf16.vlgmr.msra.gmra.mxu0 %vm425_vm1, %v2674_v3  ;;  %v2298_v63 = vcombine.low %v1137_v54, %v1151_v58  ;;  %v1181_v3 = vshrl.u32 %v1092_v53, 16  ;;  %v1186_v12 = vrot.slane %v1184_v5, 5  ;;  %v1197_v13 = vrot.slane %v1195_v7, 4  ;;  %v2339_v30 = vld [vmem:[%s2924_s24 + $0x8] sm:$0xf] }
  0x3f   : > { %2516 = vmatpush3.bf16.msra.mxu0 %v1357_v56  ;;  %2501 = vmatprep.mubr.msk.bf16.mxu0 %vm425_vm1, %v2677_v8  ;;  %v1170_v56 = vshll.u32 %v1090_v41, 16  ;;  %v1160_v8 = vrot.slane %v1159_v0, 4  ;;  %v1204_v15 = vshll.u32 %v1095_v2, 16  ;;  %v1200_v19 = vrot.slane %v1198_v11, 5  ;;  %v2683_v32 = vld [vmem:[%s2906_s14 + $0x8] ss:$8 sps:$4 sm:$0xff]  }
  0x40   : > { %2604 = vmatprep.subr.msk.bf16.mxu0 %vm438_vm0, %v3040_v27  ;;  %v1183_v10 = vrot.slane %v1181_v3, 4  ;;  %v1192_v21 = vrot.slane %v1190_v6, 5  ;;  %v1707_v25 = vsel %vm438_vm0, %v3040_v27, 0  ;;  %v2340_v33 = vld [vmem:[%s2924_s24 + $0xc] sm:$0x1]  ;;  %v1569_v35 = vshrl.u32 %v2339_v30, 16 }
  0x41   : > { %v1172_v1 = vrot.slane %v1170_v56, 5  ;;  %v1165_v17 = vsel %vm2954_vm4, %v1160_v8, %v1164_v59  ;;  %v1201_v23 = vor.u32 %v1200_v19, %v1197_v13  ;;  %v1206_v24 = vrot.slane %v1204_v15, 5  ;;  %v2341_v34 = vld [vmem:[%s2924_s24 + $0x10] sm:$0xf]  ;;  %v2342_v37 = vld [vmem:[%s2924_s24 + $0x14] sm:$0x1] }
  0x42   : > { %v1187_v20 = vor.u32 %v1186_v12, %v1183_v10  ;;  %v1572_v39 = vshll.u32 %v2339_v30, 16  ;;  %v1578_v27 = vshll.u32 %v2340_v33, 16  ;;  %v1583_v40 = vshrl.u32 %v2341_v34, 16  ;;  %v2343_v45 = vld [vmem:[%s2924_s24 + $0x18] sm:$0xf] }
  0x43   : > { %v1173_v9 = vor.u32 %v1172_v1, %v1169_v60  ;;  %v1586_v44 = vshll.u32 %v2341_v34, 16  ;;  %v1592_v14 = vshll.u32 %v2342_v37, 16  ;;  %v2682_v51 = vld [vmem:[%s2924_s24 + $0x38] ss:$8 sps:$4 sm:$0xff]   ;;  %v2346_v38 = vld [vmem:[%s2924_s24 + $0x24] sm:$0x1] }
  0x44   : > { %2508 = vmatmul.mubr.msk.bf16.vlgmr.msra.gmra.mxu1 %vm425_vm1, %v2298_v63  ;;  %v1188_v28 = vrot.slane %v1187_v20, 4  ;;  %v1574_v47 = vrot.slane %v1572_v39, 5  ;;  %v1580_v48 = vrot.slane %v1578_v27, 5  ;;  %v1585_v49 = vrot.slane %v1583_v40, 4  ;;  %v2345_v54 = vld [vmem:[%s2924_s24 + $0x20] sm:$0xf] }
  0x45   : > { %2526 = vmatpush3.bf16.msra.mxu1 %v1477_v31  ;;  %v1174_v18 = vrot.slane %v1173_v9, 4  ;;  %v1202_v31 = vrot.slane %v1201_v23, 4  ;;  %v1588_v52 = vrot.slane %v1586_v44, 5  ;;  %v1594_v53 = vrot.slane %v1592_v14, 5  ;;  %v2684_v63 = vld [vmem:[%s2906_s14 + $0x18] ss:$8 sps:$4 sm:$0xff]  }
  0x46   : > { %2502 = vmatmul.mubr.msk.bf16.gmra.mxu0 %vm425_vm1, %v2678_v42  ;;  %v1193_v36 = vsel %vm2954_vm4, %v1188_v28, %v1192_v21  ;;  %v1571_v42 = vrot.slane %v1569_v35, 4  ;;  %v1597_v56 = vshrl.u32 %v2343_v45, 16  ;;  %v1600_v57 = vshll.u32 %v2343_v45, 16  ;;  %v2685_v6 = vld [vmem:[%s2906_s14 + $0x28] ss:$8 sps:$4 sm:$0xff]  }
  0x47   : > { %2517 = vmatprep.mubr.msk.bf16.mxu0 %vm425_vm1, %v2679_v50  ;;  %v1179_v22 = vsel %vm2954_vm4, %v1174_v18, %v1178_v4  ;;  %v1207_v41 = vsel %vm2954_vm4, %v1202_v31, %v1206_v24  ;;  %v2344_v50 = vld [vmem:[%s2924_s24 + $0x1c] sm:$0x1]  ;;  %v1589_v59 = vor.u32 %v1588_v52, %v1585_v49  ;;  %v1611_v60 = vshrl.u32 %v2345_v54, 16  ;;  %v2347_v11 = vld [vmem:[%s2924_s24 + $0x28] sm:$0xf] }
  0x48   : > { %v2299_v26 = vcombine.low %v1165_v17, %v1179_v22  ;;  %v2300_v46 = vcombine.low %v1193_v36, %v1207_v41  ;;  %v1575_v55 = vor.u32 %v1574_v47, %v1571_v42  ;;  %v1606_v58 = vshll.u32 %v2344_v50, 16  ;;  %v2348_v15 = vld [vmem:[%s2924_s24 + $0x2c] sm:$0x1]  ;;  %v2350_v17 = vld [vmem:[%s2924_s24 + $0x34] sm:$0x1] }
  0x49   : > { %v1614_v61 = vshll.u32 %v2345_v54, 16  ;;  %v1620_v62 = vshll.u32 %v2346_v38, 16  ;;  %v1599_v1 = vrot.slane %v1597_v56, 4  ;;  %v1602_v2 = vrot.slane %v1600_v57, 5  ;;  %v2351_v22 = vld [vmem:[%s2924_s24 + $0x38] sm:$0xf] }
  0x4a   : > { %2511 = vmatprep.mubr.msk.bf16.mxu1 %vm425_vm1, %v2299_v26  ;;  %v1576_v0 = vrot.slane %v1575_v55, 4  ;;  %v1590_v3 = vrot.slane %v1589_v59, 4  ;;  %v1613_v4 = vrot.slane %v1611_v60, 4  ;;  %v1608_v9 = vrot.slane %v1606_v58, 5  ;;  %v2352_v28 = vld [vmem:[%s2924_s24 + $0x3c] sm:$0x1] }
  0x4b   : > { %v1616_v5 = vrot.slane %v1614_v61, 5  ;;  %v1603_v8 = vor.u32 %v1602_v2, %v1599_v1  ;;  %v1622_v10 = vrot.slane %v1620_v62, 5  ;;  %v1625_v20 = vshrl.u32 %v2347_v11, 16  ;;  %v2353_v33 = vld [vmem:[%s2924_s24 + $0x40] sm:$0xf] }
  0x4c   : > { %2512 = vmatmul.mubr.msk.bf16.gmra.mxu1 %vm425_vm1, %v2300_v46  ;;  %v1581_v7 = vsel %vm2954_vm4, %v1576_v0, %v1580_v48  ;;  %v1595_v12 = vsel %vm2954_vm4, %v1590_v3, %v1594_v53  ;;  %v1628_v21 = vshll.u32 %v2347_v11, 16  ;;  %v1634_v24 = vshll.u32 %v2348_v15, 16  ;;  %v2354_v39 = vld [vmem:[%s2924_s24 + $0x44] sm:$0x1]  ;;  %v2686_v40 = vld [vmem:[%s2906_s14 + $0x38] ss:$8 sps:$4 sm:$0xff]  }
  0x4d   : > { %2527 = vmatprep.mubr.msk.bf16.mxu1 %vm425_vm1, %v2683_v32  ;;  %v1617_v13 = vor.u32 %v1616_v5, %v1613_v4  ;;  %v2356_v18 = vcombine.low %v1581_v7, %v1595_v12  ;;  %v1604_v19 = vrot.slane %v1603_v8, 4  ;;  %v1627_v30 = vrot.slane %v1625_v20, 4  ;;  %v2687_v3 = vld [vmem:[%s3273_s5 + $0x38] sm:$0xff]   ;;  %v2688_v4 = vld [vmem:[%s3273_s5 + $0x30] sm:$0xff]   ;;  %v2690_v5 = vld [vmem:[%s3273_s5 + $0x20] sm:$0xff]   ;;  %s357_s14 = scalar_lea.vmem [#allocation2], %s2247_s16 }
  0x4e   : > { %2518 = vmatmul.mubr.msk.bf16.vlgmr.msra.gmra.mxu0 %vm425_vm1, %v2680_v16  ;;  %v2349_v16 = vld [vmem:[%s2924_s24 + $0x30] sm:$0xf]  ;;  %v1630_v31 = vrot.slane %v1628_v21, 5  ;;  %v1648_v32 = vshll.u32 %v2350_v17, 16  ;;  %v1636_v35 = vrot.slane %v1634_v24, 5  ;;  %v1653_v44 = vshrl.u32 %v2351_v22, 16  ;;  %2545 = vmatprep.subr.bf16.mxu1 %v2687_v3 }
  0x4f   : > { %2536 = vmatpush3.bf16.msra.mxu0 %v1707_v25  ;;  %2521 = vmatprep.mubr.msk.bf16.mxu0 %vm425_vm1, %v2681_v29  ;;  %v1618_v23 = vrot.slane %v1617_v13, 4  ;;  %v1639_v25 = vshrl.u32 %v2349_v16, 16  ;;  %v1642_v26 = vshll.u32 %v2349_v16, 16  ;;  %v1609_v29 = vsel %vm2954_vm4, %v1604_v19, %v1608_v9  ;;  %v2692_v7 = vld [vmem:[%s3273_s5 + $0x10] sm:$0xff]   ;;  %v2693_v8 = vld [vmem:[%s3273_s5 + $0x8] sm:$0xff]   ;;  %v2694_v9 = vld [vmem:[%s3273_s5] sm:$0xff]  }
  0x50   : > { %v1631_v41 = vor.u32 %v1630_v31, %v1627_v30  ;;  %v1650_v42 = vrot.slane %v1648_v32, 5  ;;  %v1656_v45 = vshll.u32 %v2351_v22, 16  ;;  %v1662_v46 = vshll.u32 %v2352_v28, 16  ;;  %v2696_v11 = vld [vmem:[%s3274_s6 + $0x30] sm:$0xff]   ;;  %v2697_v12 = vld [vmem:[%s3274_s6 + $0x28] sm:$0xff]   ;;  %v2698_v13 = vld [vmem:[%s3274_s6 + $0x20] sm:$0xff]  }
  0x51   : > { %v1623_v34 = vsel %vm2954_vm4, %v1618_v23, %v1622_v10  ;;  %v1641_v36 = vrot.slane %v1639_v25, 4  ;;  %v1644_v37 = vrot.slane %v1642_v26, 5  ;;  %v1667_v47 = vshrl.u32 %v2353_v33, 16  ;;  %v2695_v10 = vld [vmem:[%s3274_s6 + $0x38] sm:$0xff]   ;;  %s2385_s24 = sshll.u32 %s2771_s30, 10  ;;  %s2117_s19 = sshll.u32 %s357_s14, 4  ;;  %s3219_s19 = int_to_ptr.vmem [resolvable:$true] %s2117_s19 }
  0x52   : > { %v2357_v27 = vcombine.low %v1609_v29, %v1623_v34  ;;  %v1632_v48 = vrot.slane %v1631_v41, 4  ;;  %v1655_v49 = vrot.slane %v1653_v44, 4  ;;  %v1670_v50 = vshll.u32 %v2353_v33, 16  ;;  %2569 = vmatprep.subr.bf16.mxu0 %v2695_v10  ;;  %v2699_v15 = vld [vmem:[%s3274_s6 + $0x18] sm:$0xff]   ;;  %s3217_s22 = scalar_lea.hbm %s3276_s8, %s2385_s24  ;;  %s3223_s30 = scalar_lea.sflag [#allocation3], %s355_s26 }
  0x53   : > { %v1645_v14 = vor.u32 %v1644_v37, %v1641_v36  ;;  %v1658_v53 = vrot.slane %v1656_v45, 5  ;;  %v1664_v54 = vrot.slane %v1662_v46, 5  ;;  %v1669_v38 = vrot.slane %v1667_v47, 4  ;;  %s2703_s23 = scalar_lea.vmem %s3219_s19, 1024  ;;  %p2710_p1 = scmp.lt.s32.totalorder %s3219_s19, %s2708_s11 }
  0x54   : > { %2528 = vmatmul.mubr.msk.bf16.vlgmr.msra.gmra.mxu1 %vm425_vm1, %v2684_v63  ;;  %v1637_v55 = vsel %vm2954_vm4, %v1632_v48, %v1636_v35  ;;  %v1672_v56 = vrot.slane %v1670_v50, 5  ;;  %p2704_p12 = scmp.ne.s32.totalorder %s3219_s19, %s2703_s23  ;;  %p2711_p2 = scmp.lt.s32.totalorder %s2709_s12, %s2703_s23 }
  0x55   : > { %2531 = vmatprep.mubr.msk.bf16.mxu1 %vm425_vm1, %v2685_v6  ;;  %v1646_v52 = vrot.slane %v1645_v14, 4  ;;  %v1659_v59 = vor.u32 %v1658_v53, %v1655_v49  ;;  %2546 = vmatpush3.bf16.msra.mxu1 %v2687_v3  ;;  %v2691_v6 = vld [vmem:[%s3273_s5 + $0x18] sm:$0xff]  }
  0x56   : > { %2522 = vmatmul.mubr.msk.bf16.gmra.mxu0 %vm425_vm1, %v2682_v51  ;;  %v1676_v51 = vshll.u32 %v2354_v39, 16  ;;  %v1673_v61 = vor.u32 %v1672_v56, %v1669_v38  ;;  %2547 = vmatprep.subr.bf16.mxu1 %v2688_v4  ;;  %p2705_p13 = pnand %p2704_p12, %p2869_p4  ;;  %p2712_p3 = por %p2711_p2, %p2710_p1 }
  0x57   : > { %2537 = vmatprep.mubr.msk.bf16.mxu0 %vm425_vm1, %v2356_v18  ;;  %v1651_v58 = vsel %vm2954_vm4, %v1646_v52, %v1650_v42  ;;  %v1660_v62 = vrot.slane %v1659_v59, 4 }
  0x58   : > { %v1678_v57 = vrot.slane %v1676_v51, 5  ;;  %v2358_v60 = vcombine.low %v1637_v55, %v1651_v58  ;;  %v1674_v63 = vrot.slane %v1673_v61, 4  ;;  %p2706_p0 = pneg %p2705_p13 }
  0x59   : > { %v1665_v0 = vsel %vm2954_vm4, %v1660_v62, %v1664_v54  ;;  %2548 = vmatpush3.bf16.msra.mxu1 %v2688_v4 }
  0x5a   : > { %v1679_v1 = vsel %vm2954_vm4, %v1674_v63, %v1678_v57  ;;  %2549 = vmatprep.subr.bf16.mxu1 %v2689_v43  ;;  %p2713_p5 = pnand %p2712_p3, %p2706_p0 }
  0x5b   : > { %v2359_v2 = vcombine.low %v1665_v0, %v1679_v1 }
  0x5c   : > { %2532 = vmatmul.mubr.msk.bf16.gmra.mxu1 %vm425_vm1, %v2686_v40 }
  0x5d   : > { %2550 = vmatpush3.bf16.msra.mxu1 %v2689_v43 }
  0x5e   : > { %2538 = vmatmul.mubr.msk.bf16.vlgmr.msra.gmra.mxu0 %vm425_vm1, %v2357_v27  ;;  %2551 = vmatprep.subr.bf16.mxu1 %v2690_v5 }
  0x5f   : > { %2541 = vmatprep.mubr.msk.bf16.mxu0 %vm425_vm1, %v2358_v60  ;;  %2570 = vmatpush3.bf16.msra.mxu0 %v2695_v10 }
  0x60   : > { %2571 = vmatprep.subr.bf16.mxu0 %v2696_v11 }
  0x61   : > { %2552 = vmatpush3.bf16.msra.mxu1 %v2690_v5 }
  0x62   : > { %2553 = vmatprep.subr.bf16.mxu1 %v2691_v6 }
  0x63   : > { %2572 = vmatpush3.bf16.msra.mxu0 %v2696_v11 }
  0x64   : > { %2573 = vmatprep.subr.bf16.mxu0 %v2697_v12 }
  0x65   : > { %2554 = vmatpush3.bf16.msra.mxu1 %v2691_v6 }
  0x66   : > { %2542 = vmatmul.mubr.msk.bf16.gmra.mxu0 %vm425_vm1, %v2359_v2  ;;  %2555 = vmatprep.subr.bf16.mxu1 %v2692_v7 }
  0x67   : > { %2574 = vmatpush3.bf16.msra.mxu0 %v2697_v12 }
  0x68   : > { %2575 = vmatprep.subr.bf16.mxu0 %v2698_v13 }
  0x69   : > { %2556 = vmatpush3.bf16.msra.mxu1 %v2692_v7 }
  0x6a   : > { %2557 = vmatprep.subr.bf16.mxu1 %v2693_v8 }
  0x6b   : > { %2576 = vmatpush3.bf16.msra.mxu0 %v2698_v13 }
  0x6c   : > { %2577 = vmatprep.subr.bf16.mxu0 %v2699_v15 }
  0x6d   : > { %2558 = vmatpush3.bf16.msra.mxu1 %v2693_v8 }
  0x6e   : > { %2559 = vmatprep.subr.bf16.mxu1 %v2694_v9 }
  0x6f   : > { %2578 = vmatpush3.bf16.msra.mxu0 %v2699_v15 }
  0x71   : > { %2560 = vmatpush3.bf16.msra.mxu1 %v2694_v9 }
  0xdb   : > { %v2459_v18 = vpop.f32.mrf.mxu0 }
  0xdc   : > { %v3170_v16 = vpop.f32.mrf.mxu1 }
  0xdd   : > { %v476_v21 = vpop.f32.mrf.mxu0 }
  0xde   : > { %v492_v17 = vpop.f32.mrf.mxu1 }
  0xdf   : > { %v2460_v24 = vpop.f32.mrf.mxu0 }
  0xe0   : > { %v3172_v19 = vpop.f32.mrf.mxu1 }
  0xe1   : > { %v479_v28 = vpop.f32.mrf.mxu0 }
  0xe2   : > { %v3174_v20 = vpop.f32.mrf.mxu1 }
  0xe4   : > { %v2469_v22 = vpop.f32.mrf.mxu1 }
  0xe5   : > { %v585_v59 = vadd.f32 %v2469_v22, %v2459_v18 }
  0xe6   : > { %v576_v23 = vpop.f32.mrf.mxu1 }
  0xe7   : > { %v577_v58 = vadd.f32 %v576_v23, %v476_v21 }
  0xe8   : > { %v2470_v25 = vpop.f32.mrf.mxu1 }
  0xe9   : > { %v588_v61 = vadd.f32 %v2470_v25, %v2460_v24  ;;  %v1783_v24 = vlaneseq }
  0xea   : > { %v579_v26 = vpop.f32.mrf.mxu1 }
  0xeb   : > { %v580_v1 = vadd.f32 %v579_v26, %v479_v28 }
  0xec   : > { %v2473_v29 = vpop.f32.mrf.mxu1  ;;  %v2479_v30 = vpop.f32.mrf.mxu0 }
  0xed   : > { %v834_v2 = vadd.f32 %v2479_v30, %v585_v59  ;;  %v601_v21 = vadd.f32 %v2473_v29, %v3170_v16 }
  0xee   : > { %v592_v31 = vpop.f32.mrf.mxu1  ;;  %v801_v32 = vpop.f32.mrf.mxu0 }
  0xef   : > { %v832_v0 = vadd.f32 %v801_v32, %v577_v58  ;;  %v593_v12 = vadd.f32 %v592_v31, %v492_v17 }
  0xf0   : > { %v2474_v33 = vpop.f32.mrf.mxu1  ;;  %v2480_v34 = vpop.f32.mrf.mxu0 }
  0xf1   : > { %v835_v4 = vadd.f32 %v2480_v34, %v588_v61  ;;  %v604_v25 = vadd.f32 %v2474_v33, %v3172_v19 }
  0xf2   : > { %v595_v35 = vpop.f32.mrf.mxu1  ;;  %v804_v36 = vpop.f32.mrf.mxu0 }
  0xf3   : > { %v833_v8 = vadd.f32 %v804_v36, %v580_v1  ;;  %v596_v32 = vadd.f32 %v595_v35, %v3174_v20 }
  0xf4   : > { %v2489_v37 = vpop.f32.mrf.mxu1 }
  0xf5   : > { %v954_v6 = vadd.f32 %v2489_v37, %v834_v2 }
  0xf6   : > { %v921_v39 = vpop.f32.mrf.mxu1  ;;  %v2483_v27 = vpop.f32.mrf.mxu0 }
  0xf7   : > { %v952_v43 = vadd.f32 %v921_v39, %v832_v0 }
  0xf8   : > { %v2490_v40 = vpop.f32.mrf.mxu1  ;;  %v817_v41 = vpop.f32.mrf.mxu0 }
  0xf9   : > { %v955_v9 = vadd.f32 %v2490_v40, %v835_v4  ;;  %v836_v37 = vadd.f32 %v817_v41, %v593_v12  ;;  %v838_v40 = vadd.f32 %v2483_v27, %v601_v21 }
  0xfa   : > { %v924_v42 = vpop.f32.mrf.mxu1  ;;  %v2484_v44 = vpop.f32.mrf.mxu0 }
  0xfb   : > { %v953_v15 = vadd.f32 %v924_v42, %v833_v8  ;;  %v839_v16 = vadd.f32 %v2484_v44, %v604_v25  ;;  %v3191_v44 = vld [vmem:[%s3275_s7] sm:$0x7] }
  0xfc   : > { %v2493_v14 = vpop.f32.mrf.mxu1  ;;  %v820_v45 = vpop.f32.mrf.mxu0 }
  0xfd   : > { %v837_v33 = vadd.f32 %v820_v45, %v596_v32 }
  0xfe   : > { %v937_v46 = vpop.f32.mrf.mxu1  ;;  %v2499_v47 = vpop.f32.mrf.mxu0 }
  0xff   : > { %v1074_v22 = vadd.f32 %v2499_v47, %v954_v6  ;;  %v956_v29 = vadd.f32 %v937_v46, %v836_v37 }
 0x100   : > { %v2494_v48 = vpop.f32.mrf.mxu1  ;;  %v1041_v49 = vpop.f32.mrf.mxu0 }
 0x101   : > { %v1072_v13 = vadd.f32 %v1041_v49, %v952_v43  ;;  %v3185_v49 = vshrl.u32 %v1783_v24, 7  ;;  %v959_v20 = vadd.f32 %v2494_v48, %v839_v16 }
 0x102   : > { %v2500_v50 = vpop.f32.mrf.mxu0  ;;  %v940_v51 = vpop.f32.mrf.mxu1 }
 0x103   : > { %v1075_v26 = vadd.f32 %v2500_v50, %v955_v9  ;;  %v958_v50 = vadd.f32 %v2493_v14, %v838_v40  ;;  %v1785_v27 = vsub.s32 0, %v3185_v49 }
 0x104   : > { %v1044_v52 = vpop.f32.mrf.mxu0  ;;  %v2509_v54 = vpop.f32.mrf.mxu1 }
 0x105   : > { %v1304_v34 = vadd.f32 %v2509_v54, %v1074_v22  ;;  %v1073_v39 = vadd.f32 %v1044_v52, %v953_v15  ;;  %v957_v52 = vadd.f32 %v940_v51, %v837_v33  ;;  %v1786_v6 = vrot.slane %v3191_v44, %v1785_v27  ;;  %v2701_v27 = vld [vmem:[%s3274_s6 + $0x8] sm:$0xff]  }
 0x106   : > { %v3176_v53 = vpop.f32.mrf.mxu0  ;;  %v1271_v55 = vpop.f32.mrf.mxu1 }
 0x107   : > { %v1302_v28 = vadd.f32 %v1271_v55, %v1072_v13  ;;  %v1078_v46 = vadd.f32 %v3176_v53, %v958_v50 }
 0x108   : > { %v1057_v38 = vpop.f32.mrf.mxu0  ;;  %v2510_v57 = vpop.f32.mrf.mxu1 }
 0x109   : > { %v1305_v17 = vadd.f32 %v2510_v57, %v1075_v26  ;;  %v1076_v0 = vadd.f32 %v1057_v38, %v956_v29 }
 0x10a   : > { %v3178_v56 = vpop.f32.mrf.mxu0  ;;  %v1274_v62 = vpop.f32.mrf.mxu1 }
 0x10b   : > { %v1303_v58 = vadd.f32 %v1274_v62, %v1073_v39  ;;  %v1079_v62 = vadd.f32 %v3178_v56, %v959_v20 }
 0x10c   : > { %v3180_v60 = vpop.f32.mrf.mxu0  ;;  %v2513_v5 = vpop.f32.mrf.mxu1 }
 0x10d   : > { %v1077_v4 = vadd.f32 %v3180_v60, %v957_v52  ;;  %v1308_v38 = vadd.f32 %v2513_v5, %v1078_v46 }
 0x10e   : > { %v2519_v63 = vpop.f32.mrf.mxu0  ;;  %v1287_v10 = vpop.f32.mrf.mxu1 }
 0x10f   : > { %v1426_v55 = vadd.f32 %v2519_v63, %v1304_v34  ;;  %v1306_v63 = vadd.f32 %v1287_v10, %v1076_v0  ;;  %v2702_v0 = vld [vmem:[%s3274_s6] sm:$0xff]  }
 0x110   : > { %v1393_v3 = vpop.f32.mrf.mxu0  ;;  %v2514_v18 = vpop.f32.mrf.mxu1 }
 0x111   : > { %v1424_v47 = vadd.f32 %v1393_v3, %v1302_v28  ;;  %v1309_v8 = vadd.f32 %v2514_v18, %v1079_v62 }
 0x112   : > { %v2520_v7 = vpop.f32.mrf.mxu0  ;;  %v1290_v30 = vpop.f32.mrf.mxu1 }
 0x113   : > { %v1427_v35 = vadd.f32 %v2520_v7, %v1305_v17  ;;  %v1307_v12 = vadd.f32 %v1290_v30, %v1077_v4 }
 0x114   : > { %v1396_v11 = vpop.f32.mrf.mxu0  ;;  %v2529_v31 = vpop.f32.mrf.mxu1 }
 0x115   : > { %v1546_v57 = vadd.f32 %v2529_v31, %v1426_v55  ;;  %v1425_v1 = vadd.f32 %v1396_v11, %v1303_v58 }
 0x116   : > { %v2523_v23 = vpop.f32.mrf.mxu0  ;;  %v1513_v19 = vpop.f32.mrf.mxu1 }
 0x117   : > { %v1544_v54 = vadd.f32 %v1513_v19, %v1424_v47  ;;  %v1430_v22 = vadd.f32 %v2523_v23, %v1308_v38 }
 0x118   : > { %v1409_v36 = vpop.f32.mrf.mxu0  ;;  %v2530_v41 = vpop.f32.mrf.mxu1 }
 0x119   : > { %v1547_v45 = vadd.f32 %v2530_v41, %v1427_v35  ;;  %v1428_v53 = vadd.f32 %v1409_v36, %v1306_v63 }
 0x11a   : > { %v2524_v42 = vpop.f32.mrf.mxu0  ;;  %v1516_v14 = vpop.f32.mrf.mxu1 }
 0x11b   : > { %v1545_v2 = vadd.f32 %v1516_v14, %v1425_v1  ;;  %v1431_v25 = vadd.f32 %v2524_v42, %v1309_v8  ;;  %v1825_v1 = vsub.s32 1, %v3185_v49 }
 0x11c   : > { %v1412_v59 = vpop.f32.mrf.mxu0  ;;  %v2533_v3 = vpop.f32.mrf.mxu1 }
 0x11d   : > { %v1550_v28 = vadd.f32 %v2533_v3, %v1430_v22  ;;  %v1429_v37 = vadd.f32 %v1412_v59, %v1307_v12  ;;  %v1826_v14 = vrot.slane %v3191_v44, %v1825_v1 }
 0x11e   : > { %v2539_v61 = vpop.f32.mrf.mxu0  ;;  %v1529_v11 = vpop.f32.mrf.mxu1 }
 0x11f   : > { %v1776_v43 = vadd.f32 %v2539_v61, %v1546_v57  ;;  %v1548_v60 = vadd.f32 %v1529_v11, %v1428_v53  ;;  %v2700_v61 = vld [vmem:[%s3274_s6 + $0x10] sm:$0xff]  }
 0x120   : > { %v1743_v48 = vpop.f32.mrf.mxu0  ;;  %v2534_v10 = vpop.f32.mrf.mxu1  ;;  %2579 = vmatprep.subr.bf16.mxu0 %v2700_v61 }
 0x121   : > { %v1774_v51 = vadd.f32 %v1743_v48, %v1544_v54  ;;  %v1789_v24 = vadd.f32 %v1786_v6, %v1776_v43  ;;  %v1551_v17 = vadd.f32 %v2534_v10, %v1431_v25  ;;  %2580 = vmatpush3.bf16.msra.mxu0 %v2700_v61 }
 0x122   : > { %v2540_v7 = vpop.f32.mrf.mxu0  ;;  %v1532_v34 = vpop.f32.mrf.mxu1  ;;  %2581 = vmatprep.subr.bf16.mxu0 %v2701_v27 }
 0x123   : > { %v1777_v9 = vadd.f32 %v2540_v7, %v1547_v45  ;;  %v1787_v15 = vadd.f32 %v1786_v6, %v1774_v51  ;;  %v1797_v30 = vmax.f32 %v1789_v24, 0.0  ;;  %v1549_v40 = vadd.f32 %v1532_v34, %v1429_v37 }
 0x124   : > { %v1746_v13 = vpop.f32.mrf.mxu0 }
 0x125   : > { %v1790_v21 = vadd.f32 %v1786_v6, %v1777_v9  ;;  %v1775_v56 = vadd.f32 %v1746_v13, %v1545_v2  ;;  %v1795_v18 = vmax.f32 %v1787_v15, 0.0  ;;  %2582 = vmatpush3.bf16.msra.mxu0 %v2701_v27 }
 0x126   : > { %v2543_v32 = vpop.f32.mrf.mxu0  ;;  %2583 = vmatprep.subr.bf16.mxu0 %v2702_v0 }
 0x127   : > { %v1788_v26 = vadd.f32 %v1786_v6, %v1775_v56  ;;  %v1798_v5 = vmax.f32 %v1790_v21, 0.0  ;;  %v1780_v47 = vadd.f32 %v2543_v32, %v1550_v28 }
 0x128   : > { %v1759_v31 = vpop.f32.mrf.mxu0 }
 0x129   : > { %v1796_v39 = vmax.f32 %v1788_v26, 0.0  ;;  %v1778_v36 = vadd.f32 %v1759_v31, %v1548_v60  ;;  %v1804_v29 = vpack.c.bf16 %v1798_v5, %v1797_v30  ;;  %v1793_v55 = vadd.f32 %v1786_v6, %v1780_v47  ;;  %2584 = vmatpush3.bf16.msra.mxu0 %v2702_v0 }
 0x12a   : > { %v2544_v23 = vpop.f32.mrf.mxu0  ;;  %v1970_v5 = vsub.s32 2, %v3185_v49 }
 0x12b   : > { %v1803_v16 = vpack.c.bf16 %v1796_v39, %v1795_v18  ;;  %v1781_v58 = vadd.f32 %v2544_v23, %v1551_v17  ;;  %v1791_v19 = vadd.f32 %v1786_v6, %v1778_v36  ;;  %v1801_v41 = vmax.f32 %v1793_v55, 0.0 }
 0x12c   : > { %v1762_v42 = vpop.f32.mrf.mxu0  ;;  %v1971_v28 = vrot.slane %v3191_v44, %v1970_v5 }
 0x12d   : > { %2561 = vmatprep.mubr.bf16.mxu1 %v1803_v16  ;;  %v1794_v33 = vadd.f32 %v1786_v6, %v1781_v58  ;;  %v1779_v50 = vadd.f32 %v1762_v42, %v1549_v40  ;;  %v1799_v35 = vmax.f32 %v1791_v19, 0.0 }
 0x12e   : > { %2562 = vmatmul.mubr.bf16.vlgmr.msra.gmra.mxu1 %v1804_v29 }
 0x12f   : > { %v1792_v59 = vadd.f32 %v1786_v6, %v1779_v50  ;;  %v1802_v20 = vmax.f32 %v1794_v33, 0.0 }
 0x131   : > { %v1800_v54 = vmax.f32 %v1792_v59, 0.0  ;;  %v1806_v57 = vpack.c.bf16 %v1802_v20, %v1801_v41 }
 0x133   : > { %v1805_v52 = vpack.c.bf16 %v1800_v54, %v1799_v35 }
 0x135   : > { %2565 = vmatprep.mubr.bf16.mxu1 %v1805_v52 }
 0x136   : > { %2566 = vmatmul.mubr.bf16.gmra.mxu1 %v1806_v57 }
 0x1ee   : > { %v2563_v45 = vpop.f32.mrf.mxu1 }
 0x1ef   : > { %v1918_v51 = vadd.f32 %v2563_v45, %v1826_v14 }
 0x1f0   : > { %v1909_v46 = vpop.f32.mrf.mxu1 }
 0x1f1   : > { %v1910_v62 = vadd.f32 %v1909_v46, %v1826_v14  ;;  %v1942_v6 = vmax.f32 %v1918_v51, 0.0 }
 0x1f2   : > { %v2564_v48 = vpop.f32.mrf.mxu1 }
 0x1f3   : > { %v1921_v63 = vadd.f32 %v2564_v48, %v1826_v14  ;;  %v1940_v38 = vmax.f32 %v1910_v62, 0.0 }
 0x1f4   : > { %v1912_v2 = vpop.f32.mrf.mxu1 }
 0x1f5   : > { %v1913_v3 = vadd.f32 %v1912_v2, %v1826_v14  ;;  %v1943_v4 = vmax.f32 %v1921_v63, 0.0 }
 0x1f6   : > { %v2567_v7 = vpop.f32.mrf.mxu1 }
 0x1f7   : > { %v1941_v43 = vmax.f32 %v1913_v3, 0.0  ;;  %v1949_v9 = vpack.c.bf16 %v1943_v4, %v1942_v6  ;;  %v1934_v15 = vadd.f32 %v2567_v7, %v1826_v14 }
 0x1f8   : > { %v1925_v11 = vpop.f32.mrf.mxu1 }
 0x1f9   : > { %v1948_v8 = vpack.c.bf16 %v1941_v43, %v1940_v38  ;;  %v1926_v13 = vadd.f32 %v1925_v11, %v1826_v14  ;;  %v1946_v25 = vmax.f32 %v1934_v15, 0.0 }
 0x1fa   : > { %v2568_v12 = vpop.f32.mrf.mxu1 }
 0x1fb   : > { %2585 = vmatprep.mubr.bf16.mxu0 %v1948_v8  ;;  %v1937_v53 = vadd.f32 %v2568_v12, %v1826_v14  ;;  %v1944_v22 = vmax.f32 %v1926_v13, 0.0 }
 0x1fc   : > { %2586 = vmatmul.mubr.bf16.vlgmr.msra.gmra.mxu0 %v1949_v9  ;;  %v1928_v21 = vpop.f32.mrf.mxu1 }
 0x1fd   : > { %v1929_v56 = vadd.f32 %v1928_v21, %v1826_v14  ;;  %v1947_v10 = vmax.f32 %v1937_v53, 0.0 }
 0x1ff   : > { %v1945_v24 = vmax.f32 %v1929_v56, 0.0  ;;  %v1951_v60 = vpack.c.bf16 %v1947_v10, %v1946_v25 }
 0x201   : > { %v1950_v26 = vpack.c.bf16 %v1945_v24, %v1944_v22 }
 0x203   : > { %2589 = vmatprep.mubr.bf16.mxu0 %v1950_v26 }
 0x204   : > { %2590 = vmatmul.mubr.bf16.gmra.mxu0 %v1951_v60 }
 0x2bc   : > { %v2587_v32 = vpop.f32.mrf.mxu0 }
 0x2bd   : > { %v2063_v34 = vadd.f32 %v2587_v32, %v1971_v28 }
 0x2be   : > { %v2054_v37 = vpop.f32.mrf.mxu0 }
 0x2bf   : > { %v2087_v18 = vmax.f32 %v2063_v34, 0.0  ;;  %v2055_v39 = vadd.f32 %v2054_v37, %v1971_v28 }
 0x2c0   : > { %v2588_v17 = vpop.f32.mrf.mxu0 }
 0x2c1   : > { %2095 = vst [vmem:[%s357_s14 + $0x10] sm:$0xff] %v2087_v18  ;;  %v2085_v30 = vmax.f32 %v2055_v39, 0.0  ;;  %v2066_v31 = vadd.f32 %v2588_v17, %v1971_v28 }
 0x2c2   : > { %v2057_v36 = vpop.f32.mrf.mxu0 }
 0x2c3   : > { %2093 = vst [vmem:[%s357_s14] sm:$0xff] %v2085_v30  ;;  %v2088_v40 = vmax.f32 %v2066_v31, 0.0  ;;  %v2058_v49 = vadd.f32 %v2057_v36, %v1971_v28 }
 0x2c4   : > { %v2591_v44 = vpop.f32.mrf.mxu0 }
 0x2c5   : > { %2096 = vst [vmem:[%s357_s14 + $0x18] sm:$0xff] %v2088_v40  ;;  %v2086_v16 = vmax.f32 %v2058_v49, 0.0  ;;  %v2079_v29 = vadd.f32 %v2591_v44, %v1971_v28 }
 0x2c6   : > { %v2070_v47 = vpop.f32.mrf.mxu0 }
 0x2c7   : > { %2094 = vst [vmem:[%s357_s14 + $0x8] sm:$0xff] %v2086_v16  ;;  %v2091_v23 = vmax.f32 %v2079_v29, 0.0  ;;  %v2071_v58 = vadd.f32 %v2070_v47, %v1971_v28 }
 0x2c8   : > { %v2592_v42 = vpop.f32.mrf.mxu0 }
 0x2c9   : > { %2099 = vst [vmem:[%s357_s14 + $0x30] sm:$0xff] %v2091_v23  ;;  %v2089_v19 = vmax.f32 %v2071_v58, 0.0  ;;  %v2082_v33 = vadd.f32 %v2592_v42, %v1971_v28 }
 0x2ca   : > { %v2073_v50 = vpop.f32.mrf.mxu0 }
 0x2cb   : > { %2097 = vst [vmem:[%s357_s14 + $0x20] sm:$0xff] %v2089_v19  ;;  %v2092_v55 = vmax.f32 %v2082_v33, 0.0  ;;  %v2074_v59 = vadd.f32 %v2073_v50, %v1971_v28 }
 0x2cd   : > { %2100 = vst [vmem:[%s357_s14 + $0x38] sm:$0xff] %v2092_v55  ;;  %v2090_v20 = vmax.f32 %v2074_v59, 0.0 }
 0x2cf   : > { %2098 = vst [vmem:[%s357_s14 + $0x28] sm:$0xff] %v2090_v20 }
 0x2d0   : > { %2716 = shalt.err (!%p2713_p5)
}
 0x2d1   : > { %s2717_s26 = scalar_lea.hbm %s3217_s22, 1024  ;;  %s2721_s24 = scalar_lea.hbm %s3276_s8, 2048 }
 0x2d2   : > { %p2718_p6 = scmp.ne.s32.totalorder %s3217_s22, %s2717_s26  ;;  %p2722_p10 = scmp.lt.s32.totalorder %s3217_s22, %s3276_s8 }
 0x2d3   : > { %p2723_p11 = scmp.lt.s32.totalorder %s2721_s24, %s2717_s26 }
 0x2d4   : > { %p2719_p7 = pnand %p2718_p6, %p2869_p4 }
 0x2d5   : > { %p2724_p12 = por %p2723_p11, %p2722_p10 }
 0x2d6   : > { %p2720_p9 = pneg %p2719_p7 }
 0x2d8   : > { %p2725_p13 = pnand %p2724_p12, %p2720_p9 }
 0x2da   : > { %2728 = shalt.err (!%p2725_p13)
}
 0x2db   : > { %s2782_s23 = smov 128   ;;  %s2783_s25 = smov 8  }
 0x2dc   : > { %2606 = dma.vmem_to_hbm [thread:$0]  (%p2869_p4), %s3219_s19, 1024, %s3217_s22, %s3223_s30, %s2782_s23, %s2782_s23, %s2783_s25  }
 0x2dd PF: > { %p2612_p0 = scmp.ge.s32.totalorder %s2779_s10, 2  ;;  %s2132_s11 = sand.u32 1, %s2759_s27  }
 0x2de   : > { %s2133_s12 = scalar_lea.sflag [#allocation3], %s2132_s11 }
 0x2df   : > { %p2609_p1 = pnand %p2612_p0, %p2876_p8 }
 0x2e1   : > { %p2610_p2 = pneg %p2609_p1 }
 0x2e3   : > { %2754 = dma.done.wait (%p2610_p2), %s2133_s12, 1024  }
 0x2e4   : > { %2756 = vsyncadd (%p2610_p2), %s2133_s12, 4294966272  ;;  %s21_s10 = sadd.s32 1, %s2779_s10   ;;  %s3281_s27 = smov %s2763_s28 }
 0x2e5   : > { %p18_p3 = scmp.ge.s32.totalorder %s21_s10, 4   ;;  %s3282_s28 = smov %s2767_s29 }
 0x2e6   : > { %s3283_s29 = smov %s2882_s18  ;;  %s3284_s30 = smov %s2775_s9 }
 0x2e7   : > { %s3285_s9 = smov %s3287_s13  ;;  %20 = sbr.rel (!%p18_p3) target bundleno = 4 (0x4), region = 110 }
 0x2ec   :  { %2138 = vsyncpa [#allocation3], 1 }
 0x2ed   :  { %2140 = vsyncpa [#allocation3 + $0x1], 1 }

</bundles_post_ra>
